<compile_context>
chip_gen: v7x
topology: tpu7x:2x2x1
jax: 0.10.0
libtpu: 0.0.40
codegen_flags: <defaults>
</compile_context>

<pallas_src>
import functools

import jax
import jax.numpy as jnp
import numpy as np
from jax.experimental import pallas as pl
from jax.experimental.pallas import tpu as pltpu

K = 10           # propagation hops
ALPHA = 0.1      # cfg.gnn.ppr
RESIDUAL = True  # residual connection (requires dim_in == dim_out)

# Use the fully VMEM-resident single-invocation kernel whenever its (conservatively
# double-buffered) footprint fits this budget. Safe on v5e/v6e (128 MiB) and v7x (64 MiB).
_RESIDENT_VMEM_BUDGET = 40 * 1024 * 1024


# ------------------------------------------------------------------------------------------------
# Path A: adjacency VMEM-resident, hop loop inside the kernel (single grid step).
# ------------------------------------------------------------------------------------------------
def _eiconv_resident_kernel(residual,
                            gamma_ref,            # SMEM  (K+1,)       scalar-prefetch PPR weights
                            x_ref,                # VMEM  (Np, Dp) f32 input node features
                            adj_ref,              # VMEM  (Np, Np) bf16 normalized adjacency
                            w1_ref, b1_ref,       # VMEM  (Dp, Dp), (1, Dp)   BN folded into w1/b1
                            w2_ref, b2_ref,       # VMEM  (Dp, Dp), (1, Dp)
                            out_ref,              # VMEM  (Np, Dp) f32
                            xk_ref,               # VMEM scratch (Np, Dp) bf16   current x_k
                            hid_ref):             # VMEM scratch (Np, Dp) f32    PPR accumulator
    num_hops = gamma_ref.shape[0] - 1             # static

    # ---- MLP: Linear(+folded BN) -> ReLU -> Linear (Dropout = identity in eval) ----
    h = jnp.dot(x_ref[...], w1_ref[...], preferred_element_type=jnp.float32)
    h = jnp.maximum(h + b1_ref[...], 0.0)
    h = jnp.dot(h, w2_ref[...], preferred_element_type=jnp.float32) + b2_ref[...]
    xk_ref[...] = h.astype(xk_ref.dtype)
    hid_ref[...] = gamma_ref[0] * h

    # ---- hops 1 .. K-1: x_k = A_hat @ x_{k-1};  hidden += gamma_k * x_k ----
    # x_k carried in bf16 (f32 MXU accumulation): one extra rounding per hop vs. the reference.
    @pl.loop(1, num_hops)
    def _(k):
        xk = jnp.dot(adj_ref[...], xk_ref[...], preferred_element_type=jnp.float32)
        xk_ref[...] = xk.astype(xk_ref.dtype)
        hid_ref[...] = hid_ref[...] + gamma_ref[k] * xk

    # ---- final hop fused with the epilogue: no hid round trip, x_K never stored ----
    xk = jnp.dot(adj_ref[...], xk_ref[...], preferred_element_type=jnp.float32)
    y = jnp.maximum(hid_ref[...] + gamma_ref[num_hops] * xk, 0.0)
    if residual:
        y = y + x_ref[...]
    out_ref[...] = y.astype(out_ref.dtype)


# ------------------------------------------------------------------------------------------------
# Path B (fallback, large graphs): adjacency streamed row-tile by row-tile over a (hop, tile) grid.
# ------------------------------------------------------------------------------------------------
def _eiconv_streamed_kernel(residual,
                            gamma_ref,            # SMEM  (K+1,)
                            x_ref,                # VMEM  (TM, Dp)   (pinned to tile 0 on hops 1..K-1)
                            adj_ref,              # VMEM  (TM, Np) bf16  A_hat row tile
                            w1_ref, b1_ref,       # VMEM  (Dp, Dp), (1, Dp)
                            w2_ref, b2_ref,       # VMEM  (Dp, Dp), (1, Dp)
                            out_ref,              # VMEM  (TM, Dp)   (written only on the last hop)
                            xbuf_ref,             # VMEM scratch (2, Np, Dp) bf16  ping-pong x_k
                            hid_ref):             # VMEM scratch (Np, Dp)    f32   PPR accumulator
    num_hops = gamma_ref.shape[0] - 1             # static
    k = pl.program_id(0)                          # hop index (slow axis)
    i = pl.program_id(1)                          # row-tile index (fast axis)
    tm = out_ref.shape[0]
    rows = pl.ds(pl.multiple_of(i * tm, tm), tm)

    # ---- hop 0: MLP on this row tile, seed x-buffer and hidden accumulator ----
    @pl.when(k == 0)
    def _mlp_and_init():
        h = jnp.dot(x_ref[...], w1_ref[...], preferred_element_type=jnp.float32)
        h = jnp.maximum(h + b1_ref[...], 0.0)
        h = jnp.dot(h, w2_ref[...], preferred_element_type=jnp.float32) + b2_ref[...]
        xbuf_ref[0, rows, :] = h.astype(xbuf_ref.dtype)
        hid_ref[rows, :] = gamma_ref[0] * h

    # ---- hops 1..K-1: x_k[tile] = A_hat[tile,:] @ x_{k-1};  hidden[tile] += gamma_k * x_k ----
    @pl.when((k > 0) & (k < num_hops))
    def _propagate():
        src = (k + 1) % 2                         # buffer holding x_{k-1}
        dst = k % 2
        xk = jnp.dot(adj_ref[...], xbuf_ref[src], preferred_element_type=jnp.float32)
        xbuf_ref[dst, rows, :] = xk.astype(xbuf_ref.dtype)
        hid_ref[rows, :] = hid_ref[rows, :] + gamma_ref[k] * xk

    # ---- final hop fused with epilogue: ReLU (+ residual), single lane-dense store ----
    @pl.when(k == num_hops)
    def _last_hop_and_finalize():
        src = (k + 1) % 2
        xk = jnp.dot(adj_ref[...], xbuf_ref[src], preferred_element_type=jnp.float32)
        y = jnp.maximum(hid_ref[rows, :] + gamma_ref[k] * xk, 0.0)
        if residual:
            y = y + x_ref[...]
        out_ref[...] = y.astype(out_ref.dtype)


# ------------------------------------------------------------------------------------------------
# Host wrapper
# ------------------------------------------------------------------------------------------------
def eiconv_layer(x, adj, w1, b1, bn_scale, bn_shift, w2, b2, gamma,
                 *, tm=256, residual=RESIDUAL, force_streamed=False):
    n, d_in = x.shape
    d_out = w2.shape[1]
    if residual and d_in != d_out:
        raise ValueError("residual connection requires dim_in == dim_out")
    num_hops = int(gamma.shape[0]) - 1
    if num_hops < 1:
        raise ValueError("need at least one propagation hop")

    # Fold eval-mode BatchNorm into the first Linear (host side, free).
    w1eff = w1 * bn_scale[None, :]
    b1eff = b1 * bn_scale + bn_shift

    # Pad: feature dims -> multiple of 128 lanes, node dim -> multiple of the row tile.
    d_pad = int(pl.cdiv(max(d_in, d_out), 128)) * 128
    n_pad = int(pl.cdiv(n, tm)) * tm
    nt = n_pad // tm

    f32 = jnp.float32
    xp = jnp.zeros((n_pad, d_pad), f32).at[:n, :d_in].set(x)
    adjp = jnp.zeros((n_pad, n_pad), f32).at[:n, :n].set(adj).astype(jnp.bfloat16)
    w1p = jnp.zeros((d_pad, d_pad), f32).at[:d_in, :d_in].set(w1eff)
    b1p = jnp.zeros((1, d_pad), f32).at[0, :d_in].set(b1eff)
    w2p = jnp.zeros((d_pad, d_pad), f32).at[:d_in, :d_out].set(w2)
    b2p = jnp.zeros((1, d_pad), f32).at[0, :d_out].set(b2)

    # Conservative VMEM estimate for the resident path (blocks counted double-buffered).
    resident_blocks = (n_pad * d_pad * 4            # x
                       + n_pad * n_pad * 2          # adj (bf16)
                       + 2 * d_pad * d_pad * 4 + 2 * d_pad * 4   # weights / biases
                       + n_pad * d_pad * 4)         # out
    resident_scratch = n_pad * d_pad * 2 + n_pad * d_pad * 4
    est_resident = 2 * resident_blocks + resident_scratch
    use_resident = (not force_streamed) and est_resident <= _RESIDENT_VMEM_BUDGET

    if use_resident:
        # Adjacency, x_k and the accumulator live entirely in VMEM; hop loop is in-kernel.
        grid_spec = pltpu.PrefetchScalarGridSpec(
            num_scalar_prefetch=1,                  # gamma -> SMEM
            grid=(1,),
            in_specs=[
                pl.BlockSpec((n_pad, d_pad), lambda i, g: (0, 0)),   # x
                pl.BlockSpec((n_pad, n_pad), lambda i, g: (0, 0)),   # A_hat (bf16) — DMA'd once
                pl.BlockSpec((d_pad, d_pad), lambda i, g: (0, 0)),   # w1 (BN folded)
                pl.BlockSpec((1, d_pad), lambda i, g: (0, 0)),       # b1 (BN folded)
                pl.BlockSpec((d_pad, d_pad), lambda i, g: (0, 0)),   # w2
                pl.BlockSpec((1, d_pad), lambda i, g: (0, 0)),       # b2
            ],
            out_specs=pl.BlockSpec((n_pad, d_pad), lambda i, g: (0, 0)),
            scratch_shapes=[
                pltpu.VMEM((n_pad, d_pad), jnp.bfloat16),            # x_k
                pltpu.VMEM((n_pad, d_pad), jnp.float32),             # hidden accumulator
            ],
        )
        vmem_limit = int(min(max(est_resident + (8 << 20), 32 << 20), 56 << 20))
        out = pl.pallas_call(
            functools.partial(_eiconv_resident_kernel, residual),
            out_shape=jax.ShapeDtypeStruct((n_pad, d_pad), jnp.float32),
            grid_spec=grid_spec,
            compiler_params=pltpu.CompilerParams(
                dimension_semantics=("arbitrary",),
                vmem_limit_bytes=vmem_limit,
            ),
        )(gamma, xp, adjp, w1p, b1p, w2p, b2p)
        return out[:n, :d_out]

    # --------- streamed fallback: grid = (hop, row-tile), adjacency streamed per row tile ---------
    # Index-map pinning (review): adjacency pinned during the hop-0 MLP sweep, x pinned during
    # intermediate hops, output pinned until the final hop (written back exactly once per tile).
    adj_map = lambda k, i, g: (jnp.where(k == 0, 0, i), 0)
    if residual:
        x_map = lambda k, i, g: (jnp.where((k == 0) | (k == num_hops), i, 0), 0)
    else:
        x_map = lambda k, i, g: (jnp.where(k == 0, i, 0), 0)
    out_map = lambda k, i, g: (jnp.where(k == num_hops, i, 0), 0)

    streamed_blocks = (2 * tm * d_pad * 4           # x (double-buffered)
                       + 2 * tm * n_pad * 2         # adj (double-buffered, bf16)
                       + 2 * (2 * d_pad * d_pad * 4 + 2 * d_pad * 4)
                       + 2 * tm * d_pad * 4)        # out
    streamed_scratch = 2 * n_pad * d_pad * 2 + n_pad * d_pad * 4
    est_streamed = streamed_blocks + streamed_scratch
    vmem_limit = int(min(max(est_streamed + (8 << 20), 32 << 20), 100 << 20))
    # TODO(synk): v7x (64 MiB physical VMEM) / very large N need adjacency column-tiling
    #             ((tm, tk) blocks on a third grid axis) to bound the working set.

    grid_spec = pltpu.PrefetchScalarGridSpec(
        num_scalar_prefetch=1,                      # gamma -> SMEM
        grid=(num_hops + 1, nt),                    # (hop slow, row-tile fast)
        in_specs=[
            pl.BlockSpec((tm, d_pad), x_map),
            pl.BlockSpec((tm, n_pad), adj_map),
            pl.BlockSpec((d_pad, d_pad), lambda k, i, g: (0, 0)),
            pl.BlockSpec((1, d_pad), lambda k, i, g: (0, 0)),
            pl.BlockSpec((d_pad, d_pad), lambda k, i, g: (0, 0)),
            pl.BlockSpec((1, d_pad), lambda k, i, g: (0, 0)),
        ],
        out_specs=pl.BlockSpec((tm, d_pad), out_map),
        scratch_shapes=[
            pltpu.VMEM((2, n_pad, d_pad), jnp.bfloat16),             # ping-pong x_k
            pltpu.VMEM((n_pad, d_pad), jnp.float32),                 # hidden accumulator
        ],
    )
    out = pl.pallas_call(
        functools.partial(_eiconv_streamed_kernel, residual),
        out_shape=jax.ShapeDtypeStruct((n_pad, d_pad), jnp.float32),
        grid_spec=grid_spec,
        compiler_params=pltpu.CompilerParams(
            # Row-tile axis stays "arbitrary": it carries the shared x/hidden VMEM scratch.
            dimension_semantics=("arbitrary", "arbitrary"),
            vmem_limit_bytes=vmem_limit,
        ),
    )(gamma, xp, adjp, w1p, b1p, w2p, b2p)
    return out[:n, :d_out]


# ------------------------------------------------------------------------------------------------
# Test harness
# ------------------------------------------------------------------------------------------------
def build_normalized_adjacency(key, n):
    """Synthetic undirected graph; gcn_norm with self-loops -> dense A_hat."""
    mask = jax.random.bernoulli(key, p=0.15, shape=(n, n)).astype(jnp.float32)
    a = jnp.maximum(mask, mask.T)                  # symmetrize
    a = a * (1.0 - jnp.eye(n))                     # no explicit self loops in the edge set
    a = a + jnp.eye(n)                             # gcn_norm adds self loops (weight 1)
    deg = jnp.sum(a, axis=1)
    dinv = 1.0 / jnp.sqrt(jnp.maximum(deg, 1e-12))
    return (dinv[:, None] * a) * dinv[None, :]     # A_hat[i, j] = d_i^-1/2 A_ij d_j^-1/2


def reference(x, adj, w1, b1, bn_scale, bn_shift, w2, b2, gamma):
    h = x @ w1 + b1
    h = h * bn_scale + bn_shift
    h = jnp.maximum(h, 0.0)
    h = h @ w2 + b2
    hidden = gamma[0] * h
    xk = h
    for k in range(1, gamma.shape[0]):
        xk = adj @ xk
        hidden = hidden + gamma[k] * xk
    y = jnp.maximum(hidden, 0.0)
    return x + y if RESIDUAL else y


if __name__ == "__main__":
    N, DIM_IN, DIM_OUT = 256, 32, 32               # residual => dim_in == dim_out

    key = jax.random.PRNGKey(0)
    k_x, k_adj, k_w1, k_b1, k_w2, k_b2 = jax.random.split(key, 6)

    x = jax.random.normal(k_x, (N, DIM_IN), dtype=jnp.float32)
    adj = build_normalized_adjacency(k_adj, N)

    # MLP params (deterministic synthetic init)
    w1 = jax.random.normal(k_w1, (DIM_IN, DIM_IN), dtype=jnp.float32) * (1.0 / np.sqrt(DIM_IN))
    b1 = jax.random.normal(k_b1, (DIM_IN,), dtype=jnp.float32) * 0.01
    w2 = jax.random.normal(k_w2, (DIM_IN, DIM_OUT), dtype=jnp.float32) * (1.0 / np.sqrt(DIM_IN))
    b2 = jax.random.normal(k_b2, (DIM_OUT,), dtype=jnp.float32) * 0.01

    # BatchNorm1d at init, eval mode: running_mean=0, running_var=1, weight=1, bias=0
    eps = 1e-5
    run_mean = jnp.zeros((DIM_IN,), jnp.float32)
    run_var = jnp.ones((DIM_IN,), jnp.float32)
    bn_w = jnp.ones((DIM_IN,), jnp.float32)
    bn_b = jnp.zeros((DIM_IN,), jnp.float32)
    bn_scale = bn_w / jnp.sqrt(run_var + eps)
    bn_shift = bn_b - run_mean * bn_scale

    # PPR-init gammas: gamma_k = alpha*(1-alpha)^k for k<K, gamma_K = (1-alpha)^K
    gamma = np.array([ALPHA * (1.0 - ALPHA) ** k for k in range(K)] + [(1.0 - ALPHA) ** K],
                     dtype=np.float32)
    gamma = jnp.asarray(gamma)

    # Primary (VMEM-resident) path — auto-selected at this size.
    out_resident = jax.block_until_ready(
        eiconv_layer(x, adj, w1, b1, bn_scale, bn_shift, w2, b2, gamma))
    # Streamed fallback path — forced, to validate it as well.
    out_streamed = jax.block_until_ready(
        eiconv_layer(x, adj, w1, b1, bn_scale, bn_shift, w2, b2, gamma, force_streamed=True))

    # Reference in f32 (adjacency rounded through bf16 to match what the kernel holds).
    # Tolerance covers the additional per-hop bf16 rounding of x_k inside the kernels.
    adj_q = adj.astype(jnp.bfloat16).astype(jnp.float32)
    ref = reference(x, adj_q, w1, b1, bn_scale, bn_shift, w2, b2, gamma)
    np.testing.assert_allclose(np.asarray(out_resident), np.asarray(ref), rtol=2e-2, atol=2e-2)
    np.testing.assert_allclose(np.asarray(out_streamed), np.asarray(ref), rtol=2e-2, atol=2e-2)

    print("KERNEL_OK")
</pallas_src>

<mosaic_0001>
module attributes {stable_mosaic.version = 11 : i64} {
  func.func @_eiconv_resident_kernel(%arg0: i32, %arg1: memref<11xf32, #tpu.memory_space<smem>>, %arg2: memref<256x128xf32, #tpu.memory_space<vmem>>, %arg3: memref<256x256xbf16, #tpu.memory_space<vmem>>, %arg4: memref<128x128xf32, #tpu.memory_space<vmem>>, %arg5: memref<1x128xf32, #tpu.memory_space<vmem>>, %arg6: memref<128x128xf32, #tpu.memory_space<vmem>>, %arg7: memref<1x128xf32, #tpu.memory_space<vmem>>, %arg8: memref<256x128xf32, #tpu.memory_space<vmem>>, %arg9: memref<256x128xbf16, #tpu.memory_space<vmem>>, %arg10: memref<256x128xf32, #tpu.memory_space<vmem>>) attributes {dimension_semantics = [#tpu.dimension_semantics<arbitrary>], iteration_bounds = array<i64: 1>, scalar_prefetch = 1 : i64, scratch_operands = 2 : i64, tpu.core_type = #tpu.core_type<tc>, window_params = [{pipeline_mode = #tpu.pipeline_mode<synchronous>, transform_indices = @transform_0, window_bounds = array<i64: 256, 128>}, {pipeline_mode = #tpu.pipeline_mode<synchronous>, transform_indices = @transform_1, window_bounds = array<i64: 256, 256>}, {pipeline_mode = #tpu.pipeline_mode<synchronous>, transform_indices = @transform_2, window_bounds = array<i64: 128, 128>}, {pipeline_mode = #tpu.pipeline_mode<synchronous>, transform_indices = @transform_3, window_bounds = array<i64: 1, 128>}, {pipeline_mode = #tpu.pipeline_mode<synchronous>, transform_indices = @transform_4, window_bounds = array<i64: 128, 128>}, {pipeline_mode = #tpu.pipeline_mode<synchronous>, transform_indices = @transform_5, window_bounds = array<i64: 1, 128>}, {pipeline_mode = #tpu.pipeline_mode<synchronous>, transform_indices = @transform_6, window_bounds = array<i64: 256, 128>}]} {
    %c0 = arith.constant 0 : index
    %c0_0 = arith.constant 0 : index
    %0 = vector.load %arg2[%c0, %c0_0] : memref<256x128xf32, #tpu.memory_space<vmem>>, vector<256x128xf32>
    %c0_1 = arith.constant 0 : index
    %c0_2 = arith.constant 0 : index
    %1 = vector.load %arg4[%c0_1, %c0_2] : memref<128x128xf32, #tpu.memory_space<vmem>>, vector<128x128xf32>
    %cst = arith.constant dense<0.000000e+00> : vector<256x128xf32>
    %2 = tpu.matmul %0, %1, %cst {dimension_numbers = #tpu.dot_dimension_numbers<[1], [0], [0], [1], [0, 0, 1, 1], [], []>} : vector<256x128xf32>, vector<128x128xf32>, vector<256x128xf32> -> vector<256x128xf32>
    %c0_3 = arith.constant 0 : index
    %c0_4 = arith.constant 0 : index
    %3 = vector.load %arg5[%c0_3, %c0_4] : memref<1x128xf32, #tpu.memory_space<vmem>>, vector<1x128xf32>
    %4 = vector.broadcast %3 : vector<1x128xf32> to vector<256x128xf32>
    %5 = arith.addf %2, %4 : vector<256x128xf32>
    %cst_5 = arith.constant 0.000000e+00 : f32
    %6 = vector.broadcast %cst_5 : f32 to vector<256x128xf32>
    %7 = arith.maximumf %5, %6 : vector<256x128xf32>
    %c0_6 = arith.constant 0 : index
    %c0_7 = arith.constant 0 : index
    %8 = vector.load %arg6[%c0_6, %c0_7] : memref<128x128xf32, #tpu.memory_space<vmem>>, vector<128x128xf32>
    %cst_8 = arith.constant dense<0.000000e+00> : vector<256x128xf32>
    %9 = tpu.matmul %7, %8, %cst_8 {dimension_numbers = #tpu.dot_dimension_numbers<[1], [0], [0], [1], [0, 0, 1, 1], [], []>} : vector<256x128xf32>, vector<128x128xf32>, vector<256x128xf32> -> vector<256x128xf32>
    %c0_9 = arith.constant 0 : index
    %c0_10 = arith.constant 0 : index
    %10 = vector.load %arg7[%c0_9, %c0_10] : memref<1x128xf32, #tpu.memory_space<vmem>>, vector<1x128xf32>
    %11 = vector.broadcast %10 : vector<1x128xf32> to vector<256x128xf32>
    %12 = arith.addf %9, %11 : vector<256x128xf32>
    %13 = arith.truncf %12 : vector<256x128xf32> to vector<256x128xbf16>
    %c0_11 = arith.constant 0 : index
    %c0_12 = arith.constant 0 : index
    %14 = vector.load %arg9[%c0_11, %c0_12] : memref<256x128xbf16, #tpu.memory_space<vmem>>, vector<256x128xbf16>
    tpu.vector_store %arg9[%c0_11, %c0_12], %13 {strides = array<i32>} : memref<256x128xbf16, #tpu.memory_space<vmem>>, vector<256x128xbf16>,
    %c0_13 = arith.constant 0 : index
    %15 = memref.load %arg1[%c0_13] : memref<11xf32, #tpu.memory_space<smem>>
    %16 = vector.broadcast %15 : f32 to vector<256x128xf32>
    %17 = arith.mulf %16, %12 : vector<256x128xf32>
    %c0_14 = arith.constant 0 : index
    %c0_15 = arith.constant 0 : index
    %18 = vector.load %arg10[%c0_14, %c0_15] : memref<256x128xf32, #tpu.memory_space<vmem>>, vector<256x128xf32>
    tpu.vector_store %arg10[%c0_14, %c0_15], %17 {strides = array<i32>} : memref<256x128xf32, #tpu.memory_space<vmem>>, vector<256x128xf32>,
    %c0_i32 = arith.constant 0 : i32
    %c9_i32 = arith.constant 9 : i32
    %19 = arith.addi %c0_i32, %c9_i32 : i32
    %c1_i32 = arith.constant 1 : i32
    scf.for %arg11 = %c0_i32 to %19 step %c1_i32  : i32 {
      %c1_i32_29 = arith.constant 1 : i32
      %33 = arith.muli %arg11, %c1_i32_29 : i32
      %c1_i32_30 = arith.constant 1 : i32
      %34 = arith.addi %c1_i32_30, %33 : i32
      %c0_31 = arith.constant 0 : index
      %c0_32 = arith.constant 0 : index
      %35 = vector.load %arg3[%c0_31, %c0_32] : memref<256x256xbf16, #tpu.memory_space<vmem>>, vector<256x256xbf16>
      %c0_33 = arith.constant 0 : index
      %c0_34 = arith.constant 0 : index
      %36 = vector.load %arg9[%c0_33, %c0_34] : memref<256x128xbf16, #tpu.memory_space<vmem>>, vector<256x128xbf16>
      %cst_35 = arith.constant dense<0.000000e+00> : vector<256x128xf32>
      %37 = tpu.matmul %35, %36, %cst_35 {dimension_numbers = #tpu.dot_dimension_numbers<[1], [0], [0], [1], [0, 0, 1, 1], [], []>} : vector<256x256xbf16>, vector<256x128xbf16>, vector<256x128xf32> -> vector<256x128xf32>
      %38 = arith.truncf %37 : vector<256x128xf32> to vector<256x128xbf16>
      %c0_36 = arith.constant 0 : index
      %c0_37 = arith.constant 0 : index
      %39 = vector.load %arg9[%c0_36, %c0_37] : memref<256x128xbf16, #tpu.memory_space<vmem>>, vector<256x128xbf16>
      tpu.vector_store %arg9[%c0_36, %c0_37], %38 {strides = array<i32>} : memref<256x128xbf16, #tpu.memory_space<vmem>>, vector<256x128xbf16>,
      %c0_38 = arith.constant 0 : index
      %c0_39 = arith.constant 0 : index
      %40 = vector.load %arg10[%c0_38, %c0_39] : memref<256x128xf32, #tpu.memory_space<vmem>>, vector<256x128xf32>
      %41 = arith.index_cast %34 : i32 to index
      %42 = memref.load %arg1[%41] : memref<11xf32, #tpu.memory_space<smem>>
      %43 = vector.broadcast %42 : f32 to vector<256x128xf32>
      %44 = arith.mulf %43, %37 : vector<256x128xf32>
      %45 = arith.addf %40, %44 : vector<256x128xf32>
      %c0_40 = arith.constant 0 : index
      %c0_41 = arith.constant 0 : index
      %46 = vector.load %arg10[%c0_40, %c0_41] : memref<256x128xf32, #tpu.memory_space<vmem>>, vector<256x128xf32>
      tpu.vector_store %arg10[%c0_40, %c0_41], %45 {strides = array<i32>} : memref<256x128xf32, #tpu.memory_space<vmem>>, vector<256x128xf32>,
    }
    %c9_i32_16 = arith.constant 9 : i32
    %c0_17 = arith.constant 0 : index
    %c0_18 = arith.constant 0 : index
    %20 = vector.load %arg3[%c0_17, %c0_18] : memref<256x256xbf16, #tpu.memory_space<vmem>>, vector<256x256xbf16>
    %c0_19 = arith.constant 0 : index
    %c0_20 = arith.constant 0 : index
    %21 = vector.load %arg9[%c0_19, %c0_20] : memref<256x128xbf16, #tpu.memory_space<vmem>>, vector<256x128xbf16>
    %cst_21 = arith.constant dense<0.000000e+00> : vector<256x128xf32>
    %22 = tpu.matmul %20, %21, %cst_21 {dimension_numbers = #tpu.dot_dimension_numbers<[1], [0], [0], [1], [0, 0, 1, 1], [], []>} : vector<256x256xbf16>, vector<256x128xbf16>, vector<256x128xf32> -> vector<256x128xf32>
    %c0_22 = arith.constant 0 : index
    %c0_23 = arith.constant 0 : index
    %23 = vector.load %arg10[%c0_22, %c0_23] : memref<256x128xf32, #tpu.memory_space<vmem>>, vector<256x128xf32>
    %c10 = arith.constant 10 : index
    %24 = memref.load %arg1[%c10] : memref<11xf32, #tpu.memory_space<smem>>
    %25 = vector.broadcast %24 : f32 to vector<256x128xf32>
    %26 = arith.mulf %25, %22 : vector<256x128xf32>
    %27 = arith.addf %23, %26 : vector<256x128xf32>
    %cst_24 = arith.constant 0.000000e+00 : f32
    %28 = vector.broadcast %cst_24 : f32 to vector<256x128xf32>
    %29 = arith.maximumf %27, %28 : vector<256x128xf32>
    %c0_25 = arith.constant 0 : index
    %c0_26 = arith.constant 0 : index
    %30 = vector.load %arg2[%c0_25, %c0_26] : memref<256x128xf32, #tpu.memory_space<vmem>>, vector<256x128xf32>
    %31 = arith.addf %29, %30 : vector<256x128xf32>
    %c0_27 = arith.constant 0 : index
    %c0_28 = arith.constant 0 : index
    %32 = vector.load %arg8[%c0_27, %c0_28] : memref<256x128xf32, #tpu.memory_space<vmem>>, vector<256x128xf32>
    tpu.vector_store %arg8[%c0_27, %c0_28], %31 {strides = array<i32>} : memref<256x128xf32, #tpu.memory_space<vmem>>, vector<256x128xf32>,
    return
  }
  func.func @transform_0(%arg0: i32, %arg1: memref<11xf32, #tpu.memory_space<smem>>) -> (i32, i32) {
    %c0_i32 = arith.constant 0 : i32
    %c0_i32_0 = arith.constant 0 : i32
    %c0_i32_1 = arith.constant 0 : i32
    return %c0_i32, %c0_i32_0 : i32, i32
  }
  func.func @transform_1(%arg0: i32, %arg1: memref<11xf32, #tpu.memory_space<smem>>) -> (i32, i32) {
    %c0_i32 = arith.constant 0 : i32
    %c0_i32_0 = arith.constant 0 : i32
    %c0_i32_1 = arith.constant 0 : i32
    return %c0_i32, %c0_i32_0 : i32, i32
  }
  func.func @transform_2(%arg0: i32, %arg1: memref<11xf32, #tpu.memory_space<smem>>) -> (i32, i32) {
    %c0_i32 = arith.constant 0 : i32
    %c0_i32_0 = arith.constant 0 : i32
    %c0_i32_1 = arith.constant 0 : i32
    return %c0_i32, %c0_i32_0 : i32, i32
  }
  func.func @transform_3(%arg0: i32, %arg1: memref<11xf32, #tpu.memory_space<smem>>) -> (i32, i32) {
    %c0_i32 = arith.constant 0 : i32
    %c0_i32_0 = arith.constant 0 : i32
    %c0_i32_1 = arith.constant 0 : i32
    return %c0_i32, %c0_i32_0 : i32, i32
  }
  func.func @transform_4(%arg0: i32, %arg1: memref<11xf32, #tpu.memory_space<smem>>) -> (i32, i32) {
    %c0_i32 = arith.constant 0 : i32
    %c0_i32_0 = arith.constant 0 : i32
    %c0_i32_1 = arith.constant 0 : i32
    return %c0_i32, %c0_i32_0 : i32, i32
  }
  func.func @transform_5(%arg0: i32, %arg1: memref<11xf32, #tpu.memory_space<smem>>) -> (i32, i32) {
    %c0_i32 = arith.constant 0 : i32
    %c0_i32_0 = arith.constant 0 : i32
    %c0_i32_1 = arith.constant 0 : i32
    return %c0_i32, %c0_i32_0 : i32, i32
  }
  func.func @transform_6(%arg0: i32, %arg1: memref<11xf32, #tpu.memory_space<smem>>) -> (i32, i32) {
    %c0_i32 = arith.constant 0 : i32
    %c0_i32_0 = arith.constant 0 : i32
    %c0_i32_1 = arith.constant 0 : i32
    return %c0_i32, %c0_i32_0 : i32, i32
  }
}

</mosaic_0001>

<bundles_post_ra>
// kernel: tpu_custom_call.1
= control target key start
LH: loop header
LB: loop body
LE: loop exit
PB: predicated region body
PF: predicated region fallthrough
CT: control target
= control target key end

     0   :  { %s3131_s0 = inlined_call_operand.hbm [shape: f32[11], index: 0, kind: input, shape index: {}]   ;;  %s3132_s1 = inlined_call_operand.hbm [shape: f32[256,128], index: 1, kind: input, shape index: {}]   ;;  %s3133_s2 = inlined_call_operand.hbm [shape: bf16[256,256], index: 2, kind: input, shape index: {}]   ;;  %s3134_s3 = inlined_call_operand.hbm [shape: f32[128,128], index: 3, kind: input, shape index: {}]   ;;  %s3135_s4 = inlined_call_operand.vmem [shape: f32[1,128], index: 4, kind: input, shape index: {}]   ;;  %s3136_s5 = inlined_call_operand.hbm [shape: f32[128,128], index: 5, kind: input, shape index: {}]   ;;  %s3137_s6 = inlined_call_operand.vmem [shape: f32[1,128], index: 6, kind: input, shape index: {}]   ;;  %s3138_s7 = inlined_call_operand.hbm [shape: f32[256,128], index: 7, kind: output, shape index: {}]  }
   0x1   :  { %s2655_s26 = scalar_lea.hbm %s3131_s0, 16 }
   0x2   :  { %p2656_p0 = scmp.ne.s32.totalorder %s3131_s0, %s2655_s26  ;;  %p2659_p1 = scmp.lt.u32.totalorder %s2655_s26, %s3131_s0 }
   0x4   :  { %p2661_p2 = pnand %p2659_p1, %p2656_p0 }
   0x6   :  { %2664 = shalt.err (!%p2661_p2)  }
   0x7   :  { %s2793_s8 = smov [#allocation5]  }
   0x8   :  { %13 = dma.hbm_to_smem %s3131_s0, 16, %s2793_s8, [#allocation4] }
   0x9   :  { %2779 = dma.done.wait [#allocation4], 16 }
   0xa   :  { %2780 = vsyncadd [#allocation4], 4294967280 }
   0xb   :  { %15 = sfence }
   0xc   :  { %16 = vsyncpa [#allocation7], 0 }
   0xd   :  { %17 = vsyncpa [#allocation10], 0 }
   0xe   :  { %18 = vsyncpa [#allocation13], 0 }
   0xf   :  { %19 = vsyncpa [#allocation8], 0  ;;  %s2794_s11 = smov [#allocation9]   ;;  %s2795_s13 = smov [#allocation6]  }
  0x10   :  { %s37_s12 = sshll.u32 %s2794_s11, 4  ;;  %s25_s14 = sshll.u32 %s2795_s13, 4  ;;  %s38_s12 = int_to_ptr.vmem [resolvable:$true] %s37_s12  ;;  %s2853_s14 = int_to_ptr.vmem [resolvable:$true] %s25_s14 }
  0x11   :  { %s2665_s17 = scalar_lea.hbm %s3133_s2, 4096 }
  0x12   :  { %p2666_p3 = scmp.ne.s32.totalorder %s3133_s2, %s2665_s17  ;;  %p2669_p4 = scmp.lt.u32.totalorder %s2665_s17, %s3133_s2 }
  0x14   :  { %p2671_p5 = pnand %p2669_p4, %p2666_p3 }
  0x16   :  { %2674 = shalt.err (!%p2671_p5)
}
  0x17   :  { %s2675_s21 = scalar_lea.vmem %s38_s12, 4096  ;;  %p2680_p7 = scmp.lt.s32.totalorder %s38_s12, %s38_s12 }
  0x18   :  { %p2676_p6 = scmp.ne.s32.totalorder %s38_s12, %s2675_s21  ;;  %p2681_p8 = scmp.lt.s32.totalorder %s2675_s21, %s2675_s21 }
  0x1a   :  { %p2682_p9 = por %p2681_p8, %p2680_p7 }
  0x1c   :  { %p2683_p10 = pnand %p2682_p9, %p2676_p6 }
  0x1e   :  { %2686 = shalt.err (!%p2683_p10)
}
  0x1f   :  { %s2796_s22 = smov 128   ;;  %s2797_s23 = smov 8  }
  0x20   :  { %43 = dma.hbm_to_vmem [thread:$0]  %s3133_s2, 4096, %s38_s12, [#allocation10], %s2796_s22, %s2796_s22, %s2797_s23  }
  0x21   :  { %s2687_s28 = scalar_lea.hbm %s3132_s1, 4096 }
  0x22   :  { %p2688_p11 = scmp.ne.s32.totalorder %s3132_s1, %s2687_s28  ;;  %p2691_p12 = scmp.lt.u32.totalorder %s2687_s28, %s3132_s1 }
  0x24   :  { %p2693_p13 = pnand %p2691_p12, %p2688_p11 }
  0x26   :  { %2696 = shalt.err (!%p2693_p13)
}
  0x27   :  { %s2697_s10 = scalar_lea.vmem %s2853_s14, 4096  ;;  %p2702_p1 = scmp.lt.s32.totalorder %s2853_s14, %s2853_s14 }
  0x28   :  { %p2698_p0 = scmp.ne.s32.totalorder %s2853_s14, %s2697_s10  ;;  %p2703_p2 = scmp.lt.s32.totalorder %s2697_s10, %s2697_s10 }
  0x2a   :  { %p2704_p3 = por %p2703_p2, %p2702_p1 }
  0x2c   :  { %p2705_p4 = pnand %p2704_p3, %p2698_p0 }
  0x2e   :  { %2708 = shalt.err (!%p2705_p4)
}
  0x2f   :  { %31 = dma.hbm_to_vmem [thread:$0]  %s3132_s1, 4096, %s2853_s14, [#allocation7], %s2796_s22, %s2796_s22, %s2797_s23  }
  0x30   :  { %s2798_s12 = smov [#allocation11]   ;;  %s2799_s15 = smov [#allocation12]  }
  0x31   :  { %s49_s13 = sshll.u32 %s2798_s12, 4  ;;  %s63_s16 = sshll.u32 %s2799_s15, 4  ;;  %s50_s13 = int_to_ptr.vmem [resolvable:$true] %s49_s13  ;;  %s2890_s16 = int_to_ptr.vmem [resolvable:$true] %s63_s16 }
  0x32   :  { %s2709_s0 = scalar_lea.hbm %s3134_s3, 2048 }
  0x33   :  { %p2710_p5 = scmp.ne.s32.totalorder %s3134_s3, %s2709_s0  ;;  %p2713_p6 = scmp.lt.u32.totalorder %s2709_s0, %s3134_s3 }
  0x35   :  { %p2715_p7 = pnand %p2713_p6, %p2710_p5 }
  0x37   :  { %2718 = shalt.err (!%p2715_p7)
}
  0x38   :  { %s2719_s1 = scalar_lea.vmem %s50_s13, 2048  ;;  %p2724_p9 = scmp.lt.s32.totalorder %s50_s13, %s50_s13 }
  0x39   :  { %p2720_p8 = scmp.ne.s32.totalorder %s50_s13, %s2719_s1  ;;  %p2725_p10 = scmp.lt.s32.totalorder %s2719_s1, %s2719_s1 }
  0x3b   :  { %p2726_p11 = por %p2725_p10, %p2724_p9 }
  0x3d   :  { %p2727_p12 = pnand %p2726_p11, %p2720_p8 }
  0x3f   :  { %2730 = shalt.err (!%p2727_p12)
}
  0x40   :  { %55 = dma.hbm_to_vmem [thread:$0]  %s3134_s3, 2048, %s50_s13, [#allocation10], %s2796_s22, %s2796_s22, %s2797_s23  }
  0x41   :  { %s2731_s28 = scalar_lea.hbm %s3136_s5, 2048 }
  0x42   :  { %p2732_p13 = scmp.ne.s32.totalorder %s3136_s5, %s2731_s28  ;;  %p2735_p0 = scmp.lt.u32.totalorder %s2731_s28, %s3136_s5 }
  0x44   :  { %p2737_p1 = pnand %p2735_p0, %p2732_p13 }
  0x46   :  { %2740 = shalt.err (!%p2737_p1)
}
  0x47   :  { %s2741_s10 = scalar_lea.vmem %s2890_s16, 2048  ;;  %p2746_p3 = scmp.lt.s32.totalorder %s2890_s16, %s2890_s16 }
  0x48   :  { %p2742_p2 = scmp.ne.s32.totalorder %s2890_s16, %s2741_s10  ;;  %p2747_p4 = scmp.lt.s32.totalorder %s2741_s10, %s2741_s10 }
  0x4a   :  { %p2748_p5 = por %p2747_p4, %p2746_p3 }
  0x4c   :  { %p2749_p6 = pnand %p2748_p5, %p2742_p2 }
  0x4e   :  { %2752 = shalt.err (!%p2749_p6)
}
  0x4f   :  { %69 = dma.hbm_to_vmem [thread:$0]  %s3136_s5, 2048, %s2890_s16, [#allocation13], %s2796_s22, %s2796_s22, %s2797_s23  }
  0x50   :  { %2781 = dma.done.wait [#allocation7], 4096  }
  0x51   :  { %2782 = vsyncadd [#allocation7], 4294963200 }
  0x52   :  { %2783 = dma.done.wait [#allocation10], 6144  }
  0x53   :  { %2784 = vsyncadd [#allocation10], 4294961152 }
  0x54   :  { %2785 = dma.done.wait [#allocation13], 2048  }
  0x55   :  { %2786 = vsyncadd [#allocation13], 4294965248  ;;  %v117_v0 = vld [vmem:[#allocation11] sm:$0xff]  ;;  %v118_v1 = vld [vmem:[#allocation11 + $0x8] sm:$0xff] }
  0x56   :  { %v119_v2 = vld [vmem:[#allocation11 + $0x10] sm:$0xff]  ;;  %v2447_v3 = vpack.c.bf16 %v118_v1, %v117_v0  ;;  %v120_v4 = vld [vmem:[#allocation11 + $0x18] sm:$0xff]  ;;  %v121_v6 = vld [vmem:[#allocation11 + $0x20] sm:$0xff] }
  0x57   :  { %v2451_v5 = vpack.c.bf16 %v120_v4, %v119_v2  ;;  %v122_v7 = vld [vmem:[#allocation11 + $0x28] sm:$0xff]  ;;  %v85_v9 = vld [vmem:[#allocation6] sm:$0xff]  ;;  %v123_v10 = vld [vmem:[#allocation11 + $0x30] sm:$0xff] }
  0x58   :  { %2448 = vmatprep.subr.bf16.mxu0 %v2447_v3  ;;  %v2455_v8 = vpack.c.bf16 %v122_v7, %v121_v6  ;;  %v124_v11 = vld [vmem:[#allocation11 + $0x38] sm:$0xff]  ;;  %2319 = vmatprep.mubr.f32.mxu0 %v85_v9  ;;  %v125_v13 = vld [vmem:[#allocation11 + $0x40] sm:$0xff]  ;;  %v126_v14 = vld [vmem:[#allocation11 + $0x48] sm:$0xff] }
  0x59   :  { %2450 = vmatpush3.bf16.msra.mxu0 %v2447_v3  ;;  %v2459_v12 = vpack.c.bf16 %v124_v11, %v123_v10  ;;  %v2463_v15 = vpack.c.bf16 %v126_v14, %v125_v13  ;;  %v127_v16 = vld [vmem:[#allocation11 + $0x50] sm:$0xff]  ;;  %v128_v17 = vld [vmem:[#allocation11 + $0x58] sm:$0xff]  ;;  %v397_v18 = vld [vmem:[#allocation12] sm:$0xff] }
  0x5a   :  { %2452 = vmatprep.subr.bf16.mxu0 %v2451_v5  ;;  %v398_v19 = vld [vmem:[#allocation12 + $0x8] sm:$0xff]  ;;  %v399_v20 = vld [vmem:[#allocation12 + $0x10] sm:$0xff]  ;;  %v2467_v21 = vpack.c.bf16 %v128_v17, %v127_v16  ;;  %v129_v22 = vld [vmem:[#allocation11 + $0x60] sm:$0xff] }
  0x5b   :  { %v2479_v23 = vpack.c.bf16 %v398_v19, %v397_v18  ;;  %v400_v24 = vld [vmem:[#allocation12 + $0x18] sm:$0xff]  ;;  %v130_v25 = vld [vmem:[#allocation11 + $0x68] sm:$0xff]  ;;  %v401_v27 = vld [vmem:[#allocation12 + $0x20] sm:$0xff] }
  0x5c   :  { %v2483_v26 = vpack.c.bf16 %v400_v24, %v399_v20  ;;  %v402_v28 = vld [vmem:[#allocation12 + $0x28] sm:$0xff]  ;;  %v2471_v29 = vpack.c.bf16 %v130_v25, %v129_v22  ;;  %v131_v30 = vld [vmem:[#allocation11 + $0x70] sm:$0xff]  ;;  %v132_v32 = vld [vmem:[#allocation11 + $0x78] sm:$0xff] }
  0x5d   :  { %2454 = vmatpush3.bf16.msra.mxu0 %v2451_v5  ;;  %2480 = vmatprep.subr.bf16.mxu1 %v2479_v23  ;;  %v2487_v31 = vpack.c.bf16 %v402_v28, %v401_v27  ;;  %v403_v33 = vld [vmem:[#allocation12 + $0x30] sm:$0xff]  ;;  %v404_v34 = vld [vmem:[#allocation12 + $0x38] sm:$0xff]  ;;  %v2475_v35 = vpack.c.bf16 %v132_v32, %v131_v30  ;;  %v405_v37 = vld [vmem:[#allocation12 + $0x40] sm:$0xff] }
  0x5e   :  { %2456 = vmatprep.subr.bf16.mxu0 %v2455_v8  ;;  %2482 = vmatpush3.bf16.msra.mxu1 %v2479_v23  ;;  %v2491_v36 = vpack.c.bf16 %v404_v34, %v403_v33  ;;  %v406_v38 = vld [vmem:[#allocation12 + $0x48] sm:$0xff]  ;;  %v407_v40 = vld [vmem:[#allocation12 + $0x50] sm:$0xff]  ;;  %v408_v41 = vld [vmem:[#allocation12 + $0x58] sm:$0xff] }
  0x5f   :  { %2484 = vmatprep.subr.bf16.mxu1 %v2483_v26  ;;  %v2495_v39 = vpack.c.bf16 %v406_v38, %v405_v37  ;;  %v86_v42 = vld [vmem:[#allocation6 + $0x8] sm:$0xff]  ;;  %v87_v43 = vld [vmem:[#allocation6 + $0x10] sm:$0xff]  ;;  %v2499_v44 = vpack.c.bf16 %v408_v41, %v407_v40  ;;  %v409_v45 = vld [vmem:[#allocation12 + $0x60] sm:$0xff] }
  0x60   :  { %v410_v46 = vld [vmem:[#allocation12 + $0x68] sm:$0xff]  ;;  %v88_v47 = vld [vmem:[#allocation6 + $0x18] sm:$0xff]  ;;  %v89_v48 = vld [vmem:[#allocation6 + $0x20] sm:$0xff] }
  0x61   :  { %2458 = vmatpush3.bf16.msra.mxu0 %v2455_v8  ;;  %v2503_v49 = vpack.c.bf16 %v410_v46, %v409_v45  ;;  %v90_v50 = vld [vmem:[#allocation6 + $0x28] sm:$0xff]  ;;  %v91_v51 = vld [vmem:[#allocation6 + $0x30] sm:$0xff]  ;;  %v92_v52 = vld [vmem:[#allocation6 + $0x38] sm:$0xff] }
  0x62   :  { %2460 = vmatprep.subr.bf16.mxu0 %v2459_v12  ;;  %2486 = vmatpush3.bf16.msra.mxu1 %v2483_v26  ;;  %v93_v53 = vld [vmem:[#allocation6 + $0x40] sm:$0xff]  ;;  %v94_v54 = vld [vmem:[#allocation6 + $0x48] sm:$0xff]  ;;  %v95_v55 = vld [vmem:[#allocation6 + $0x50] sm:$0xff] }
  0x63   :  { %2488 = vmatprep.subr.bf16.mxu1 %v2487_v31  ;;  %v96_v56 = vld [vmem:[#allocation6 + $0x58] sm:$0xff]  ;;  %v97_v57 = vld [vmem:[#allocation6 + $0x60] sm:$0xff]  ;;  %v98_v58 = vld [vmem:[#allocation6 + $0x68] sm:$0xff] }
  0x64   :  { %v99_v59 = vld [vmem:[#allocation6 + $0x70] sm:$0xff]  ;;  %v100_v60 = vld [vmem:[#allocation6 + $0x78] sm:$0xff]  ;;  %v101_v61 = vld [vmem:[#allocation6 + $0x80] sm:$0xff] }
  0x65   :  { %2462 = vmatpush3.bf16.msra.mxu0 %v2459_v12  ;;  %v102_v62 = vld [vmem:[#allocation6 + $0x88] sm:$0xff]  ;;  %v103_v63 = vld [vmem:[#allocation6 + $0x90] sm:$0xff]  ;;  %v104_v0 = vld [vmem:[#allocation6 + $0x98] sm:$0xff] }
  0x66   :  { %2464 = vmatprep.subr.bf16.mxu0 %v2463_v15  ;;  %2490 = vmatpush3.bf16.msra.mxu1 %v2487_v31  ;;  %v105_v1 = vld [vmem:[#allocation6 + $0xa0] sm:$0xff]  ;;  %v106_v2 = vld [vmem:[#allocation6 + $0xa8] sm:$0xff]  ;;  %v107_v3 = vld [vmem:[#allocation6 + $0xb0] sm:$0xff] }
  0x67   :  { %2492 = vmatprep.subr.bf16.mxu1 %v2491_v36  ;;  %v108_v4 = vld [vmem:[#allocation6 + $0xb8] sm:$0xff]  ;;  %v109_v5 = vld [vmem:[#allocation6 + $0xc0] sm:$0xff]  ;;  %v110_v6 = vld [vmem:[#allocation6 + $0xc8] sm:$0xff] }
  0x68   :  { %v111_v7 = vld [vmem:[#allocation6 + $0xd0] sm:$0xff]  ;;  %v112_v8 = vld [vmem:[#allocation6 + $0xd8] sm:$0xff]  ;;  %v113_v9 = vld [vmem:[#allocation6 + $0xe0] sm:$0xff] }
  0x69   :  { %2466 = vmatpush3.bf16.msra.mxu0 %v2463_v15  ;;  %v114_v10 = vld [vmem:[#allocation6 + $0xe8] sm:$0xff]  ;;  %v115_v11 = vld [vmem:[#allocation6 + $0xf0] sm:$0xff]  ;;  %v116_v12 = vld [vmem:[#allocation6 + $0xf8] sm:$0xff] }
  0x6a   :  { %2468 = vmatprep.subr.bf16.mxu0 %v2467_v21  ;;  %2494 = vmatpush3.bf16.msra.mxu1 %v2491_v36  ;;  %v411_v13 = vld [vmem:[#allocation12 + $0x70] sm:$0xff]  ;;  %v412_v14 = vld [vmem:[#allocation12 + $0x78] sm:$0xff]  ;;  %v2930_v16 = vld [vmem:[%s3135_s4] ss:$0 sm:$0xff]  ;;  %s677_s4 = sld [smem:[#allocation5]] }
  0x6b   :  { %2496 = vmatprep.subr.bf16.mxu1 %v2495_v39  ;;  %v2507_v15 = vpack.c.bf16 %v412_v14, %v411_v13 }
  0x6d   :  { %2470 = vmatpush3.bf16.msra.mxu0 %v2467_v21 }
  0x6e   :  { %2472 = vmatprep.subr.bf16.mxu0 %v2471_v29  ;;  %2498 = vmatpush3.bf16.msra.mxu1 %v2495_v39 }
  0x6f   :  { %2500 = vmatprep.subr.bf16.mxu1 %v2499_v44 }
  0x71   :  { %2474 = vmatpush3.bf16.msra.mxu0 %v2471_v29 }
  0x72   :  { %2476 = vmatprep.subr.bf16.mxu0 %v2475_v35  ;;  %2502 = vmatpush3.bf16.msra.mxu1 %v2499_v44 }
  0x73   :  { %2504 = vmatprep.subr.bf16.mxu1 %v2503_v49 }
  0x75   :  { %2478 = vmatpush3.bf16.msra.mxu0 %v2475_v35 }
  0x76   :  { %2506 = vmatpush3.bf16.msra.mxu1 %v2503_v49 }
  0x77   :  { %2508 = vmatprep.subr.bf16.mxu1 %v2507_v15 }
  0x78   :  { %2320 = vmatmul.mubr.f32.vlgmr.msra.gmra.mrb[0].mxu0 %v86_v42 }
  0x79   :  { %2322 = vmatprep.mubr.f32.mxu0 %v87_v43 }
  0x7a   :  { %2510 = vmatpush3.bf16.msra.mxu1 %v2507_v15 }
  0x7c   :  { %2323 = vmatmul.mubr.f32.gmra.mrb[2].mxu0 %v88_v47 }
  0x7d   :  { %2325 = vmatprep.mubr.f32.mxu0 %v89_v48 }
  0x80   :  { %2326 = vmatmul.mubr.f32.gmra.mrb[4].mxu0 %v90_v50 }
  0x81   :  { %2328 = vmatprep.mubr.f32.mxu0 %v91_v51 }
  0x84   :  { %2329 = vmatmul.mubr.f32.gmra.mrb[6].mxu0 %v92_v52 }
  0x85   :  { %2331 = vmatprep.mubr.f32.mxu0 %v93_v53 }
  0x88   :  { %2332 = vmatmul.mubr.f32.gmra.mrb[8].mxu0 %v94_v54 }
  0x89   :  { %2334 = vmatprep.mubr.f32.mxu0 %v95_v55 }
  0x8c   :  { %2335 = vmatmul.mubr.f32.gmra.mrb[10].mxu0 %v96_v56 }
  0x8d   :  { %2337 = vmatprep.mubr.f32.mxu0 %v97_v57 }
  0x90   :  { %2338 = vmatmul.mubr.f32.gmra.mrb[12].mxu0 %v98_v58 }
  0x91   :  { %2340 = vmatprep.mubr.f32.mxu0 %v99_v59 }
  0x94   :  { %2341 = vmatmul.mubr.f32.gmra.mrb[14].mxu0 %v100_v60 }
  0x95   :  { %2343 = vmatprep.mubr.f32.mxu0 %v101_v61 }
  0x98   :  { %2344 = vmatmul.mubr.f32.gmra.mrb[16].mxu0 %v102_v62 }
  0x99   :  { %2346 = vmatprep.mubr.f32.mxu0 %v103_v63 }
  0x9c   :  { %2347 = vmatmul.mubr.f32.gmra.mrb[18].mxu0 %v104_v0 }
  0x9d   :  { %2349 = vmatprep.mubr.f32.mxu0 %v105_v1 }
  0xa0   :  { %2350 = vmatmul.mubr.f32.gmra.mrb[20].mxu0 %v106_v2 }
  0xa1   :  { %2352 = vmatprep.mubr.f32.mxu0 %v107_v3 }
  0xa4   :  { %2353 = vmatmul.mubr.f32.gmra.mrb[22].mxu0 %v108_v4 }
  0xa5   :  { %2355 = vmatprep.mubr.f32.mxu0 %v109_v5 }
  0xa8   :  { %2356 = vmatmul.mubr.f32.gmra.mrb[24].mxu0 %v110_v6 }
  0xa9   :  { %2358 = vmatprep.mubr.f32.mxu0 %v111_v7 }
  0xac   :  { %2359 = vmatmul.mubr.f32.gmra.mrb[26].mxu0 %v112_v8 }
  0xad   :  { %2361 = vmatprep.mubr.f32.mxu0 %v113_v9 }
  0xb0   :  { %2362 = vmatmul.mubr.f32.gmra.mrb[28].mxu0 %v114_v10 }
  0xb1   :  { %2364 = vmatprep.mubr.f32.mxu0 %v115_v11 }
  0xb4   :  { %2365 = vmatmul.mubr.f32.gmra.mrb[30].mxu0 %v116_v12 }
 0x14b   :  { %v2321_v17 = vpop.f32.mrb[0].mxu0 }
 0x14c   :  { %v212_v18 = vadd.f32 %v2321_v17, %v2930_v16  ;;  %v206_v19 = vpop.f32.mrb[1].mxu0 }
 0x14d   :  { %v207_v20 = vadd.f32 %v2930_v16, %v206_v19 }
 0x14e   :  { %v366_v23 = vmax.f32 %v212_v18, 0.0 }
 0x14f   :  { %v2324_v21 = vpop.f32.mrb[2].mxu0  ;;  %v365_v22 = vmax.f32 %v207_v20, 0.0 }
 0x150   :  { %v222_v24 = vadd.f32 %v2324_v21, %v2930_v16  ;;  %v216_v25 = vpop.f32.mrb[3].mxu0 }
 0x151   :  { %v217_v26 = vadd.f32 %v2930_v16, %v216_v25  ;;  %2399 = vmatprep.mubr.f32.mxu1 %v365_v22 }
 0x152   :  { %2400 = vmatmul.mubr.f32.vlgmr.msra.gmra.mrb[0].mxu1 %v366_v23  ;;  %v368_v29 = vmax.f32 %v222_v24, 0.0 }
 0x153   :  { %v367_v27 = vmax.f32 %v217_v26, 0.0  ;;  %v2327_v28 = vpop.f32.mrb[4].mxu0 }
 0x154   :  { %v232_v30 = vadd.f32 %v2327_v28, %v2930_v16  ;;  %v226_v31 = vpop.f32.mrb[5].mxu0 }
 0x155   :  { %v227_v32 = vadd.f32 %v2930_v16, %v226_v31  ;;  %2402 = vmatprep.mubr.f32.mxu1 %v367_v27 }
 0x156   :  { %2403 = vmatmul.mubr.f32.gmra.mrb[2].mxu1 %v368_v29  ;;  %v370_v35 = vmax.f32 %v232_v30, 0.0 }
 0x157   :  { %v369_v33 = vmax.f32 %v227_v32, 0.0  ;;  %v2330_v34 = vpop.f32.mrb[6].mxu0 }
 0x158   :  { %v242_v36 = vadd.f32 %v2330_v34, %v2930_v16  ;;  %v236_v37 = vpop.f32.mrb[7].mxu0 }
 0x159   :  { %v237_v38 = vadd.f32 %v2930_v16, %v236_v37  ;;  %2405 = vmatprep.mubr.f32.mxu1 %v369_v33 }
 0x15a   :  { %2406 = vmatmul.mubr.f32.gmra.mrb[4].mxu1 %v370_v35  ;;  %v372_v41 = vmax.f32 %v242_v36, 0.0 }
 0x15b   :  { %v371_v39 = vmax.f32 %v237_v38, 0.0  ;;  %v2333_v40 = vpop.f32.mrb[8].mxu0 }
 0x15c   :  { %v252_v42 = vadd.f32 %v2333_v40, %v2930_v16  ;;  %v246_v43 = vpop.f32.mrb[9].mxu0 }
 0x15d   :  { %v247_v44 = vadd.f32 %v2930_v16, %v246_v43  ;;  %2408 = vmatprep.mubr.f32.mxu1 %v371_v39 }
 0x15e   :  { %2409 = vmatmul.mubr.f32.gmra.mrb[6].mxu1 %v372_v41  ;;  %v374_v47 = vmax.f32 %v252_v42, 0.0 }
 0x15f   :  { %v373_v45 = vmax.f32 %v247_v44, 0.0  ;;  %v2336_v46 = vpop.f32.mrb[10].mxu0 }
 0x160   :  { %v262_v48 = vadd.f32 %v2336_v46, %v2930_v16  ;;  %v256_v49 = vpop.f32.mrb[11].mxu0 }
 0x161   :  { %v257_v50 = vadd.f32 %v2930_v16, %v256_v49  ;;  %2411 = vmatprep.mubr.f32.mxu1 %v373_v45 }
 0x162   :  { %2412 = vmatmul.mubr.f32.gmra.mrb[8].mxu1 %v374_v47  ;;  %v376_v53 = vmax.f32 %v262_v48, 0.0 }
 0x163   :  { %v375_v51 = vmax.f32 %v257_v50, 0.0  ;;  %v2339_v52 = vpop.f32.mrb[12].mxu0  ;;  %v2967_v50 = vld [vmem:[%s3137_s6] ss:$0 sm:$0xff]  ;;  %s3035_s6 = smov 0  }
 0x164   :  { %v272_v54 = vadd.f32 %v2339_v52, %v2930_v16  ;;  %v266_v55 = vpop.f32.mrb[13].mxu0  ;;  %v2969_v52 = vstv %s677_s4 }
 0x165   :  { %v267_v56 = vadd.f32 %v2930_v16, %v266_v55  ;;  %2414 = vmatprep.mubr.f32.mxu1 %v375_v51 }
 0x166   :  { %2415 = vmatmul.mubr.f32.gmra.mrb[10].mxu1 %v376_v53  ;;  %v378_v59 = vmax.f32 %v272_v54, 0.0 }
 0x167   :  { %v377_v57 = vmax.f32 %v267_v56, 0.0  ;;  %v2342_v58 = vpop.f32.mrb[14].mxu0 }
 0x168   :  { %v282_v60 = vadd.f32 %v2342_v58, %v2930_v16  ;;  %v276_v61 = vpop.f32.mrb[15].mxu0 }
 0x169   :  { %v277_v62 = vadd.f32 %v2930_v16, %v276_v61  ;;  %2417 = vmatprep.mubr.f32.mxu1 %v377_v57 }
 0x16a   :  { %2418 = vmatmul.mubr.f32.gmra.mrb[12].mxu1 %v378_v59  ;;  %v380_v1 = vmax.f32 %v282_v60, 0.0 }
 0x16b   :  { %v379_v63 = vmax.f32 %v277_v62, 0.0  ;;  %v2345_v0 = vpop.f32.mrb[16].mxu0 }
 0x16c   :  { %v292_v2 = vadd.f32 %v2345_v0, %v2930_v16  ;;  %v286_v3 = vpop.f32.mrb[17].mxu0 }
 0x16d   :  { %v287_v4 = vadd.f32 %v2930_v16, %v286_v3  ;;  %2420 = vmatprep.mubr.f32.mxu1 %v379_v63 }
 0x16e   :  { %2421 = vmatmul.mubr.f32.gmra.mrb[14].mxu1 %v380_v1  ;;  %v382_v7 = vmax.f32 %v292_v2, 0.0 }
 0x16f   :  { %v381_v5 = vmax.f32 %v287_v4, 0.0  ;;  %v2348_v6 = vpop.f32.mrb[18].mxu0 }
 0x170   :  { %v302_v8 = vadd.f32 %v2348_v6, %v2930_v16  ;;  %v296_v9 = vpop.f32.mrb[19].mxu0 }
 0x171   :  { %v297_v10 = vadd.f32 %v2930_v16, %v296_v9  ;;  %2423 = vmatprep.mubr.f32.mxu1 %v381_v5 }
 0x172   :  { %2424 = vmatmul.mubr.f32.gmra.mrb[16].mxu1 %v382_v7  ;;  %v384_v13 = vmax.f32 %v302_v8, 0.0 }
 0x173   :  { %v383_v11 = vmax.f32 %v297_v10, 0.0  ;;  %v2351_v12 = vpop.f32.mrb[20].mxu0 }
 0x174   :  { %v312_v14 = vadd.f32 %v2351_v12, %v2930_v16  ;;  %v306_v15 = vpop.f32.mrb[21].mxu0 }
 0x175   :  { %v307_v17 = vadd.f32 %v2930_v16, %v306_v15  ;;  %2426 = vmatprep.mubr.f32.mxu1 %v383_v11 }
 0x176   :  { %2427 = vmatmul.mubr.f32.gmra.mrb[18].mxu1 %v384_v13  ;;  %v386_v20 = vmax.f32 %v312_v14, 0.0 }
 0x177   :  { %v385_v18 = vmax.f32 %v307_v17, 0.0  ;;  %v2354_v19 = vpop.f32.mrb[22].mxu0 }
 0x178   :  { %v322_v21 = vadd.f32 %v2354_v19, %v2930_v16  ;;  %v316_v22 = vpop.f32.mrb[23].mxu0 }
 0x179   :  { %v317_v23 = vadd.f32 %v2930_v16, %v316_v22  ;;  %2429 = vmatprep.mubr.f32.mxu1 %v385_v18 }
 0x17a   :  { %2430 = vmatmul.mubr.f32.gmra.mrb[20].mxu1 %v386_v20  ;;  %v388_v26 = vmax.f32 %v322_v21, 0.0 }
 0x17b   :  { %v387_v24 = vmax.f32 %v317_v23, 0.0  ;;  %v2357_v25 = vpop.f32.mrb[24].mxu0 }
 0x17c   :  { %v332_v27 = vadd.f32 %v2357_v25, %v2930_v16  ;;  %v326_v28 = vpop.f32.mrb[25].mxu0 }
 0x17d   :  { %v327_v29 = vadd.f32 %v2930_v16, %v326_v28  ;;  %2432 = vmatprep.mubr.f32.mxu1 %v387_v24 }
 0x17e   :  { %2433 = vmatmul.mubr.f32.gmra.mrb[22].mxu1 %v388_v26  ;;  %v390_v32 = vmax.f32 %v332_v27, 0.0 }
 0x17f   :  { %v389_v30 = vmax.f32 %v327_v29, 0.0  ;;  %v2360_v31 = vpop.f32.mrb[26].mxu0 }
 0x180   :  { %v342_v33 = vadd.f32 %v2360_v31, %v2930_v16  ;;  %v336_v34 = vpop.f32.mrb[27].mxu0 }
 0x181   :  { %v337_v35 = vadd.f32 %v2930_v16, %v336_v34  ;;  %2435 = vmatprep.mubr.f32.mxu1 %v389_v30 }
 0x182   :  { %2436 = vmatmul.mubr.f32.gmra.mrb[24].mxu1 %v390_v32  ;;  %v392_v38 = vmax.f32 %v342_v33, 0.0 }
 0x183   :  { %v391_v36 = vmax.f32 %v337_v35, 0.0  ;;  %v2363_v37 = vpop.f32.mrb[28].mxu0 }
 0x184   :  { %v352_v39 = vadd.f32 %v2363_v37, %v2930_v16  ;;  %v346_v40 = vpop.f32.mrb[29].mxu0 }
 0x185   :  { %v347_v41 = vadd.f32 %v2930_v16, %v346_v40  ;;  %2438 = vmatprep.mubr.f32.mxu1 %v391_v36 }
 0x186   :  { %2439 = vmatmul.mubr.f32.gmra.mrb[26].mxu1 %v392_v38  ;;  %v394_v44 = vmax.f32 %v352_v39, 0.0 }
 0x187   :  { %v393_v42 = vmax.f32 %v347_v41, 0.0  ;;  %v2366_v43 = vpop.f32.mrb[30].mxu0 }
 0x188   :  { %v362_v45 = vadd.f32 %v2366_v43, %v2930_v16  ;;  %v356_v46 = vpop.f32.mrb[31].mxu0 }
 0x189   :  { %v357_v47 = vadd.f32 %v2930_v16, %v356_v46  ;;  %2441 = vmatprep.mubr.f32.mxu1 %v393_v42 }
 0x18a   :  { %2442 = vmatmul.mubr.f32.gmra.mrb[28].mxu1 %v394_v44  ;;  %v396_v49 = vmax.f32 %v362_v45, 0.0 }
 0x18b   :  { %v395_v48 = vmax.f32 %v357_v47, 0.0 }
 0x18d   :  { %2444 = vmatprep.mubr.f32.mxu1 %v395_v48 }
 0x18e   :  { %2445 = vmatmul.mubr.f32.gmra.mrb[30].mxu1 %v396_v49 }
 0x225   :  { %v2401_v51 = vpop.f32.mrb[0].mxu1 }
 0x226   :  { %v492_v53 = vadd.f32 %v2401_v51, %v2967_v50  ;;  %v486_v54 = vpop.f32.mrb[1].mxu1 }
 0x227   :  { %v487_v16 = vadd.f32 %v2967_v50, %v486_v54 }
 0x228   :  { %v680_v55 = vmul.f32 %v2969_v52, %v492_v53 }
 0x229   :  { %v645_v56 = vpack.c.bf16 %v492_v53, %v487_v16  ;;  %v679_v57 = vmul.f32 %v2969_v52, %v487_v16  ;;  %v2404_v58 = vpop.f32.mrb[2].mxu1 }
 0x22a   :  { %712 = vst [vmem:[#allocation3 + $0x8] sm:$0xff] %v680_v55  ;;  %v502_v59 = vadd.f32 %v2404_v58, %v2967_v50  ;;  %v496_v60 = vpop.f32.mrb[3].mxu1 }
 0x22b   :  { %661 = vst [vmem:[#allocation2] sm:$0xff] %v645_v56  ;;  %711 = vst [vmem:[#allocation3] sm:$0xff] %v679_v57  ;;  %v497_v61 = vadd.f32 %v2967_v50, %v496_v60 }
 0x22c   :  { %v682_v62 = vmul.f32 %v2969_v52, %v502_v59 }
 0x22d   :  { %v646_v63 = vpack.c.bf16 %v502_v59, %v497_v61  ;;  %v681_v0 = vmul.f32 %v2969_v52, %v497_v61  ;;  %v2407_v1 = vpop.f32.mrb[4].mxu1 }
 0x22e   :  { %714 = vst [vmem:[#allocation3 + $0x18] sm:$0xff] %v682_v62  ;;  %v512_v2 = vadd.f32 %v2407_v1, %v2967_v50  ;;  %v506_v3 = vpop.f32.mrb[5].mxu1 }
 0x22f   :  { %662 = vst [vmem:[#allocation2 + $0x8] sm:$0xff] %v646_v63  ;;  %713 = vst [vmem:[#allocation3 + $0x10] sm:$0xff] %v681_v0  ;;  %v507_v4 = vadd.f32 %v2967_v50, %v506_v3 }
 0x230   :  { %v684_v5 = vmul.f32 %v2969_v52, %v512_v2 }
 0x231   :  { %v647_v6 = vpack.c.bf16 %v512_v2, %v507_v4  ;;  %v683_v7 = vmul.f32 %v2969_v52, %v507_v4  ;;  %v2410_v8 = vpop.f32.mrb[6].mxu1 }
 0x232   :  { %716 = vst [vmem:[#allocation3 + $0x28] sm:$0xff] %v684_v5  ;;  %v522_v9 = vadd.f32 %v2410_v8, %v2967_v50  ;;  %v516_v10 = vpop.f32.mrb[7].mxu1 }
 0x233   :  { %663 = vst [vmem:[#allocation2 + $0x10] sm:$0xff] %v647_v6  ;;  %715 = vst [vmem:[#allocation3 + $0x20] sm:$0xff] %v683_v7  ;;  %v517_v11 = vadd.f32 %v2967_v50, %v516_v10 }
 0x234   :  { %v686_v12 = vmul.f32 %v2969_v52, %v522_v9 }
 0x235   :  { %v648_v13 = vpack.c.bf16 %v522_v9, %v517_v11  ;;  %v685_v14 = vmul.f32 %v2969_v52, %v517_v11  ;;  %v2413_v15 = vpop.f32.mrb[8].mxu1 }
 0x236   :  { %718 = vst [vmem:[#allocation3 + $0x38] sm:$0xff] %v686_v12  ;;  %v532_v17 = vadd.f32 %v2413_v15, %v2967_v50  ;;  %v526_v18 = vpop.f32.mrb[9].mxu1 }
 0x237   :  { %664 = vst [vmem:[#allocation2 + $0x18] sm:$0xff] %v648_v13  ;;  %717 = vst [vmem:[#allocation3 + $0x30] sm:$0xff] %v685_v14  ;;  %v527_v19 = vadd.f32 %v2967_v50, %v526_v18 }
 0x238   :  { %v688_v20 = vmul.f32 %v2969_v52, %v532_v17 }
 0x239   :  { %v649_v21 = vpack.c.bf16 %v532_v17, %v527_v19  ;;  %v687_v22 = vmul.f32 %v2969_v52, %v527_v19  ;;  %v2416_v23 = vpop.f32.mrb[10].mxu1 }
 0x23a   :  { %720 = vst [vmem:[#allocation3 + $0x48] sm:$0xff] %v688_v20  ;;  %v542_v24 = vadd.f32 %v2416_v23, %v2967_v50  ;;  %v536_v25 = vpop.f32.mrb[11].mxu1 }
 0x23b   :  { %665 = vst [vmem:[#allocation2 + $0x20] sm:$0xff] %v649_v21  ;;  %719 = vst [vmem:[#allocation3 + $0x40] sm:$0xff] %v687_v22  ;;  %v537_v26 = vadd.f32 %v2967_v50, %v536_v25 }
 0x23c   :  { %v690_v27 = vmul.f32 %v2969_v52, %v542_v24 }
 0x23d   :  { %v650_v28 = vpack.c.bf16 %v542_v24, %v537_v26  ;;  %v689_v29 = vmul.f32 %v2969_v52, %v537_v26  ;;  %v2419_v30 = vpop.f32.mrb[12].mxu1 }
 0x23e   :  { %722 = vst [vmem:[#allocation3 + $0x58] sm:$0xff] %v690_v27  ;;  %v552_v31 = vadd.f32 %v2419_v30, %v2967_v50  ;;  %v546_v32 = vpop.f32.mrb[13].mxu1 }
 0x23f   :  { %666 = vst [vmem:[#allocation2 + $0x28] sm:$0xff] %v650_v28  ;;  %721 = vst [vmem:[#allocation3 + $0x50] sm:$0xff] %v689_v29  ;;  %v547_v33 = vadd.f32 %v2967_v50, %v546_v32 }
 0x240   :  { %v692_v34 = vmul.f32 %v2969_v52, %v552_v31 }
 0x241   :  { %v651_v35 = vpack.c.bf16 %v552_v31, %v547_v33  ;;  %v691_v36 = vmul.f32 %v2969_v52, %v547_v33  ;;  %v2422_v37 = vpop.f32.mrb[14].mxu1 }
 0x242   :  { %724 = vst [vmem:[#allocation3 + $0x68] sm:$0xff] %v692_v34  ;;  %v562_v38 = vadd.f32 %v2422_v37, %v2967_v50  ;;  %v556_v39 = vpop.f32.mrb[15].mxu1 }
 0x243   :  { %667 = vst [vmem:[#allocation2 + $0x30] sm:$0xff] %v651_v35  ;;  %723 = vst [vmem:[#allocation3 + $0x60] sm:$0xff] %v691_v36  ;;  %v557_v40 = vadd.f32 %v2967_v50, %v556_v39 }
 0x244   :  { %v694_v41 = vmul.f32 %v2969_v52, %v562_v38 }
 0x245   :  { %v652_v42 = vpack.c.bf16 %v562_v38, %v557_v40  ;;  %v693_v43 = vmul.f32 %v2969_v52, %v557_v40  ;;  %v2425_v44 = vpop.f32.mrb[16].mxu1 }
 0x246   :  { %726 = vst [vmem:[#allocation3 + $0x78] sm:$0xff] %v694_v41  ;;  %v572_v45 = vadd.f32 %v2425_v44, %v2967_v50  ;;  %v566_v46 = vpop.f32.mrb[17].mxu1 }
 0x247   :  { %668 = vst [vmem:[#allocation2 + $0x38] sm:$0xff] %v652_v42  ;;  %725 = vst [vmem:[#allocation3 + $0x70] sm:$0xff] %v693_v43  ;;  %v567_v47 = vadd.f32 %v2967_v50, %v566_v46 }
 0x248   :  { %v696_v48 = vmul.f32 %v2969_v52, %v572_v45 }
 0x249   :  { %v653_v49 = vpack.c.bf16 %v572_v45, %v567_v47  ;;  %v695_v51 = vmul.f32 %v2969_v52, %v567_v47  ;;  %v2428_v53 = vpop.f32.mrb[18].mxu1 }
 0x24a   :  { %728 = vst [vmem:[#allocation3 + $0x88] sm:$0xff] %v696_v48  ;;  %v582_v54 = vadd.f32 %v2428_v53, %v2967_v50  ;;  %v576_v16 = vpop.f32.mrb[19].mxu1 }
 0x24b   :  { %669 = vst [vmem:[#allocation2 + $0x40] sm:$0xff] %v653_v49  ;;  %727 = vst [vmem:[#allocation3 + $0x80] sm:$0xff] %v695_v51  ;;  %v577_v55 = vadd.f32 %v2967_v50, %v576_v16 }
 0x24c   :  { %v698_v56 = vmul.f32 %v2969_v52, %v582_v54 }
 0x24d   :  { %v654_v57 = vpack.c.bf16 %v582_v54, %v577_v55  ;;  %v697_v58 = vmul.f32 %v2969_v52, %v577_v55  ;;  %v2431_v59 = vpop.f32.mrb[20].mxu1 }
 0x24e   :  { %730 = vst [vmem:[#allocation3 + $0x98] sm:$0xff] %v698_v56  ;;  %v592_v60 = vadd.f32 %v2431_v59, %v2967_v50  ;;  %v586_v61 = vpop.f32.mrb[21].mxu1 }
 0x24f   :  { %670 = vst [vmem:[#allocation2 + $0x48] sm:$0xff] %v654_v57  ;;  %729 = vst [vmem:[#allocation3 + $0x90] sm:$0xff] %v697_v58  ;;  %v587_v62 = vadd.f32 %v2967_v50, %v586_v61 }
 0x250   :  { %v700_v63 = vmul.f32 %v2969_v52, %v592_v60 }
 0x251   :  { %v655_v0 = vpack.c.bf16 %v592_v60, %v587_v62  ;;  %v699_v1 = vmul.f32 %v2969_v52, %v587_v62  ;;  %v2434_v2 = vpop.f32.mrb[22].mxu1 }
 0x252   :  { %732 = vst [vmem:[#allocation3 + $0xa8] sm:$0xff] %v700_v63  ;;  %v602_v3 = vadd.f32 %v2434_v2, %v2967_v50  ;;  %v596_v4 = vpop.f32.mrb[23].mxu1 }
 0x253   :  { %671 = vst [vmem:[#allocation2 + $0x50] sm:$0xff] %v655_v0  ;;  %731 = vst [vmem:[#allocation3 + $0xa0] sm:$0xff] %v699_v1  ;;  %v597_v5 = vadd.f32 %v2967_v50, %v596_v4 }
 0x254   :  { %v702_v6 = vmul.f32 %v2969_v52, %v602_v3 }
 0x255   :  { %v656_v7 = vpack.c.bf16 %v602_v3, %v597_v5  ;;  %v701_v8 = vmul.f32 %v2969_v52, %v597_v5  ;;  %v2437_v9 = vpop.f32.mrb[24].mxu1 }
 0x256   :  { %734 = vst [vmem:[#allocation3 + $0xb8] sm:$0xff] %v702_v6  ;;  %v612_v10 = vadd.f32 %v2437_v9, %v2967_v50  ;;  %v606_v11 = vpop.f32.mrb[25].mxu1 }
 0x257   :  { %672 = vst [vmem:[#allocation2 + $0x58] sm:$0xff] %v656_v7  ;;  %733 = vst [vmem:[#allocation3 + $0xb0] sm:$0xff] %v701_v8  ;;  %v607_v12 = vadd.f32 %v2967_v50, %v606_v11 }
 0x258   :  { %v704_v13 = vmul.f32 %v2969_v52, %v612_v10 }
 0x259   :  { %v657_v14 = vpack.c.bf16 %v612_v10, %v607_v12  ;;  %v703_v15 = vmul.f32 %v2969_v52, %v607_v12  ;;  %v2440_v17 = vpop.f32.mrb[26].mxu1 }
 0x25a   :  { %736 = vst [vmem:[#allocation3 + $0xc8] sm:$0xff] %v704_v13  ;;  %v622_v18 = vadd.f32 %v2440_v17, %v2967_v50  ;;  %v616_v19 = vpop.f32.mrb[27].mxu1 }
 0x25b   :  { %673 = vst [vmem:[#allocation2 + $0x60] sm:$0xff] %v657_v14  ;;  %735 = vst [vmem:[#allocation3 + $0xc0] sm:$0xff] %v703_v15  ;;  %v617_v20 = vadd.f32 %v2967_v50, %v616_v19 }
 0x25c   :  { %v706_v21 = vmul.f32 %v2969_v52, %v622_v18 }
 0x25d   :  { %v658_v22 = vpack.c.bf16 %v622_v18, %v617_v20  ;;  %v705_v23 = vmul.f32 %v2969_v52, %v617_v20  ;;  %v2443_v24 = vpop.f32.mrb[28].mxu1 }
 0x25e   :  { %738 = vst [vmem:[#allocation3 + $0xd8] sm:$0xff] %v706_v21  ;;  %v632_v25 = vadd.f32 %v2443_v24, %v2967_v50  ;;  %v626_v26 = vpop.f32.mrb[29].mxu1 }
 0x25f   :  { %674 = vst [vmem:[#allocation2 + $0x68] sm:$0xff] %v658_v22  ;;  %737 = vst [vmem:[#allocation3 + $0xd0] sm:$0xff] %v705_v23  ;;  %v627_v27 = vadd.f32 %v2967_v50, %v626_v26 }
 0x260   :  { %v708_v28 = vmul.f32 %v2969_v52, %v632_v25 }
 0x261   :  { %v659_v29 = vpack.c.bf16 %v632_v25, %v627_v27  ;;  %v707_v30 = vmul.f32 %v2969_v52, %v627_v27  ;;  %v2446_v31 = vpop.f32.mrb[30].mxu1 }
 0x262   :  { %740 = vst [vmem:[#allocation3 + $0xe8] sm:$0xff] %v708_v28  ;;  %v642_v32 = vadd.f32 %v2446_v31, %v2967_v50  ;;  %v636_v33 = vpop.f32.mrb[31].mxu1 }
 0x263   :  { %675 = vst [vmem:[#allocation2 + $0x70] sm:$0xff] %v659_v29  ;;  %739 = vst [vmem:[#allocation3 + $0xe0] sm:$0xff] %v707_v30  ;;  %v637_v34 = vadd.f32 %v2967_v50, %v636_v33 }
 0x264   :  { %v710_v35 = vmul.f32 %v2969_v52, %v642_v32 }
 0x265   :  { %v660_v36 = vpack.c.bf16 %v642_v32, %v637_v34  ;;  %v709_v37 = vmul.f32 %v2969_v52, %v637_v34 }
 0x266   :  { %742 = vst [vmem:[#allocation3 + $0xf8] sm:$0xff] %v710_v35 }
 0x267   :  { %676 = vst [vmem:[#allocation2 + $0x78] sm:$0xff] %v660_v36  ;;  %741 = vst [vmem:[#allocation3 + $0xf0] sm:$0xff] %v709_v37 }
 0x268 LB: > { %v790_v38 = vld [vmem:[#allocation2 + $0x40] sm:$0xff]  ;;  %v791_v40 = vld [vmem:[#allocation2 + $0x48] sm:$0xff]  ;;  %v792_v52 = vld [vmem:[#allocation2 + $0x50] sm:$0xff]  ;;  %s3041_s6 = sadd.s32 1, %s2791_s6   ;;  %s2791_s6 = sphi %s3035_s6, %s3041_s6  }
 0x269   : > { %v782_v39 = vld [vmem:[#allocation2] sm:$0xff]  ;;  %2063 = vmatprep.subr.bf16.mxu0 %v790_v38  ;;  %2511 = vmatprep.subr.bf16.mxu1 %v790_v38  ;;  %v783_v50 = vld [vmem:[#allocation2 + $0x8] sm:$0xff]  ;;  %v784_v42 = vld [vmem:[#allocation2 + $0x10] sm:$0xff]  ;;  %s1183_s15 = sld [smem:[#allocation5 + %s3041_s6]]  ;;  %p745_p7 = scmp.ge.s32.totalorder %s3041_s6, 9  }
 0x26a   : > { %2064 = vmatpush3.bf16.msra.mxu0 %v782_v39  ;;  %2519 = vmatpush3.bf16.msra.mxu1 %v782_v39  ;;  %v2561_v41 = vld [vmem:[#allocation9 + $0x4] ss:$8 sps:$4 sm:$0xff]   ;;  %v793_v44 = vld [vmem:[#allocation2 + $0x58] sm:$0xff]  ;;  %v796_v51 = vld [vmem:[#allocation2 + $0x70] sm:$0xff]  ;;  %s1966_s16 = sld [smem:[#allocation5 + $0xa]] (%p745_p7)  ;;  %s2800_s17 = smov (%p745_p7), [#allocation14]  }
 0x26b   : > { %2065 = vmatprep.subr.bf16.mxu0 %v791_v40  ;;  %2512 = vmatprep.subr.bf16.mxu1 %v791_v40  ;;  %v2564_v43 = vld [vmem:[#allocation9 + $0x84] ss:$8 sps:$4 sm:$0xff]   ;;  %v785_v45 = vld [vmem:[#allocation2 + $0x18] sm:$0xff]  ;;  %v788_v53 = vld [vmem:[#allocation2 + $0x30] sm:$0xff]  ;;  %s1881_s18 = sshll.u32 (%p745_p7), %s2800_s17, 4  ;;  %s1882_s18 = int_to_ptr.vmem [resolvable:$true] %s1881_s18 }
 0x26c   : > { %990 = vmatprep.mubr.bf16.mxu0 %v2561_v41  ;;  %1054 = vmatprep.mubr.bf16.mxu1 %v2564_v43  ;;  %v794_v46 = vld [vmem:[#allocation2 + $0x60] sm:$0xff]  ;;  %v795_v48 = vld [vmem:[#allocation2 + $0x68] sm:$0xff]  ;;  %v789_v16 = vld [vmem:[#allocation2 + $0x38] sm:$0xff]  ;;  %s2753_s0 = scalar_lea.vmem (%p745_p7), %s1882_s18, 4096  ;;  %p2758_p9 = scmp.lt.s32.totalorder (%p745_p7), %s1882_s18, %s1882_s18 }
 0x26d   : > { %v786_v47 = vld [vmem:[#allocation2 + $0x20] sm:$0xff]  ;;  %v787_v49 = vld [vmem:[#allocation2 + $0x28] sm:$0xff]  ;;  %v2565_v57 = vld [vmem:[#allocation9 + $0x14] ss:$8 sps:$4 sm:$0xff]   ;;  %p2754_p8 = scmp.ne.s32.totalorder (%p745_p7), %s1882_s18, %s2753_s0  ;;  %p2759_p10 = scmp.lt.s32.totalorder (%p745_p7), %s2753_s0, %s2753_s0 }
 0x26e   : > { %2066 = vmatpush3.bf16.msra.mxu0 %v783_v50  ;;  %2520 = vmatpush3.bf16.msra.mxu1 %v783_v50  ;;  %v797_v54 = vld [vmem:[#allocation2 + $0x78] sm:$0xff]  ;;  %v2559_v55 = vld [vmem:[#allocation9] ss:$8 sps:$4 sm:$0xff]   ;;  %v2571_v61 = vld [vmem:[#allocation9 + $0x24] ss:$8 sps:$4 sm:$0xff]  }
 0x26f   : > { %2067 = vmatprep.subr.bf16.mxu0 %v792_v52  ;;  %2513 = vmatprep.subr.bf16.mxu1 %v792_v52  ;;  %v2562_v56 = vld [vmem:[#allocation9 + $0x80] ss:$8 sps:$4 sm:$0xff]   ;;  %v2567_v58 = vld [vmem:[#allocation9 + $0x94] ss:$8 sps:$4 sm:$0xff]   ;;  %v2569_v59 = vld [vmem:[#allocation9 + $0x10] ss:$8 sps:$4 sm:$0xff]   ;;  %v3044_v25 = vstv %s1183_s15  ;;  %p2760_p11 = por (%p745_p7), %p2759_p10, %p2758_p9 }
 0x270   : > { %v2570_v60 = vld [vmem:[#allocation9 + $0x90] ss:$8 sps:$4 sm:$0xff]   ;;  %v2573_v62 = vld [vmem:[#allocation9 + $0xa4] ss:$8 sps:$4 sm:$0xff]   ;;  %v2575_v63 = vld [vmem:[#allocation9 + $0x20] ss:$8 sps:$4 sm:$0xff]  }
 0x271   : > { %v2576_v0 = vld [vmem:[#allocation9 + $0xa0] ss:$8 sps:$4 sm:$0xff]   ;;  %v2577_v1 = vld [vmem:[#allocation9 + $0x34] ss:$8 sps:$4 sm:$0xff]   ;;  %v2581_v3 = vld [vmem:[#allocation9 + $0x30] ss:$8 sps:$4 sm:$0xff]   ;;  %p2761_p12 = pnand (%p745_p7), %p2760_p11, %p2754_p8 }
 0x272   : > { %2068 = vmatpush3.bf16.msra.mxu0 %v784_v42  ;;  %2521 = vmatpush3.bf16.msra.mxu1 %v784_v42  ;;  %v2579_v2 = vld [vmem:[#allocation9 + $0xb4] ss:$8 sps:$4 sm:$0xff]   ;;  %v2582_v4 = vld [vmem:[#allocation9 + $0xb0] ss:$8 sps:$4 sm:$0xff]   ;;  %v2583_v5 = vld [vmem:[#allocation9 + $0x44] ss:$8 sps:$4 sm:$0xff]  }
 0x273   : > { %2069 = vmatprep.subr.bf16.mxu0 %v793_v44  ;;  %2514 = vmatprep.subr.bf16.mxu1 %v793_v44  ;;  %v2585_v6 = vld [vmem:[#allocation9 + $0xc4] ss:$8 sps:$4 sm:$0xff]   ;;  %v2587_v7 = vld [vmem:[#allocation9 + $0x40] ss:$8 sps:$4 sm:$0xff]   ;;  %v2589_v9 = vld [vmem:[#allocation9 + $0x54] ss:$8 sps:$4 sm:$0xff]  }
 0x274   : > { %v2588_v8 = vld [vmem:[#allocation9 + $0xc0] ss:$8 sps:$4 sm:$0xff]   ;;  %v2591_v10 = vld [vmem:[#allocation9 + $0xd4] ss:$8 sps:$4 sm:$0xff]   ;;  %v2593_v11 = vld [vmem:[#allocation9 + $0x50] ss:$8 sps:$4 sm:$0xff]  }
 0x275   : > { %v2594_v12 = vld [vmem:[#allocation9 + $0xd0] ss:$8 sps:$4 sm:$0xff]   ;;  %v2595_v13 = vld [vmem:[#allocation9 + $0x64] ss:$8 sps:$4 sm:$0xff]   ;;  %v2599_v15 = vld [vmem:[#allocation9 + $0x60] ss:$8 sps:$4 sm:$0xff]  }
 0x276   : > { %2070 = vmatpush3.bf16.msra.mxu0 %v785_v45  ;;  %2522 = vmatpush3.bf16.msra.mxu1 %v785_v45  ;;  %v2597_v14 = vld [vmem:[#allocation9 + $0xe4] ss:$8 sps:$4 sm:$0xff]   ;;  %v2600_v17 = vld [vmem:[#allocation9 + $0xe0] ss:$8 sps:$4 sm:$0xff]   ;;  %v2601_v18 = vld [vmem:[#allocation9 + $0x74] ss:$8 sps:$4 sm:$0xff]  }
 0x277   : > { %2071 = vmatprep.subr.bf16.mxu0 %v794_v46  ;;  %2515 = vmatprep.subr.bf16.mxu1 %v794_v46  ;;  %v2603_v19 = vld [vmem:[#allocation9 + $0xf4] ss:$8 sps:$4 sm:$0xff]   ;;  %v2605_v20 = vld [vmem:[#allocation9 + $0x70] ss:$8 sps:$4 sm:$0xff]   ;;  %v1151_v31 = vld [vmem:[#allocation3] sm:$0xff] }
 0x278   : > { %v2606_v21 = vld [vmem:[#allocation9 + $0xf0] ss:$8 sps:$4 sm:$0xff]   ;;  %v1167_v32 = vld [vmem:[#allocation3 + $0x80] sm:$0xff]  ;;  %v1152_v39 = vld [vmem:[#allocation3 + $0x8] sm:$0xff] }
 0x279   : > { %v1168_v42 = vld [vmem:[#allocation3 + $0x88] sm:$0xff] }
 0x27a   : > { %2072 = vmatpush3.bf16.msra.mxu0 %v786_v47  ;;  %2523 = vmatpush3.bf16.msra.mxu1 %v786_v47 }
 0x27b   : > { %2073 = vmatprep.subr.bf16.mxu0 %v795_v48  ;;  %2516 = vmatprep.subr.bf16.mxu1 %v795_v48 }
 0x27e   : > { %2074 = vmatpush3.bf16.msra.mxu0 %v787_v49  ;;  %2524 = vmatpush3.bf16.msra.mxu1 %v787_v49 }
 0x27f   : > { %2075 = vmatprep.subr.bf16.mxu0 %v796_v51  ;;  %2517 = vmatprep.subr.bf16.mxu1 %v796_v51 }
 0x282   : > { %2076 = vmatpush3.bf16.msra.mxu0 %v788_v53  ;;  %2525 = vmatpush3.bf16.msra.mxu1 %v788_v53 }
 0x283   : > { %2077 = vmatprep.subr.bf16.mxu0 %v797_v54  ;;  %2518 = vmatprep.subr.bf16.mxu1 %v797_v54 }
 0x286   : > { %2078 = vmatpush3.bf16.msra.mxu0 %v789_v16  ;;  %2526 = vmatpush3.bf16.msra.mxu1 %v789_v16 }
 0x289   : > { %991 = vmatmul.mubr.bf16.vlgmr.msra.gmra.mrb[0].mxu0 %v2559_v55  ;;  %1055 = vmatmul.mubr.bf16.vlgmr.msra.gmra.mrb[0].mxu1 %v2562_v56  ;;  %v1153_v56 = vld [vmem:[#allocation3 + $0x10] sm:$0xff] }
 0x28a   : > { %998 = vmatprep.mubr.bf16.mxu0 %v2565_v57  ;;  %1062 = vmatprep.mubr.bf16.mxu1 %v2567_v58  ;;  %v1169_v57 = vld [vmem:[#allocation3 + $0x90] sm:$0xff] }
 0x291   : > { %999 = vmatmul.mubr.bf16.gmra.mrb[4].mxu0 %v2569_v59  ;;  %1063 = vmatmul.mubr.bf16.gmra.mrb[4].mxu1 %v2570_v60 }
 0x292   : > { %1006 = vmatprep.mubr.bf16.mxu0 %v2571_v61  ;;  %1070 = vmatprep.mubr.bf16.mxu1 %v2573_v62 }
 0x299   : > { %1007 = vmatmul.mubr.bf16.gmra.mrb[8].mxu0 %v2575_v63  ;;  %1071 = vmatmul.mubr.bf16.gmra.mrb[8].mxu1 %v2576_v0  ;;  %v1154_v0 = vld [vmem:[#allocation3 + $0x18] sm:$0xff] }
 0x29a   : > { %1014 = vmatprep.mubr.bf16.mxu0 %v2577_v1  ;;  %1078 = vmatprep.mubr.bf16.mxu1 %v2579_v2 }
 0x2a1   : > { %1015 = vmatmul.mubr.bf16.gmra.mrb[12].mxu0 %v2581_v3  ;;  %1079 = vmatmul.mubr.bf16.gmra.mrb[12].mxu1 %v2582_v4 }
 0x2a2   : > { %1022 = vmatprep.mubr.bf16.mxu0 %v2583_v5  ;;  %1086 = vmatprep.mubr.bf16.mxu1 %v2585_v6  ;;  %v1170_v5 = vld [vmem:[#allocation3 + $0x98] sm:$0xff] }
 0x2a9   : > { %1023 = vmatmul.mubr.bf16.gmra.mrb[16].mxu0 %v2587_v7  ;;  %1087 = vmatmul.mubr.bf16.gmra.mrb[16].mxu1 %v2588_v8 }
 0x2aa   : > { %1030 = vmatprep.mubr.bf16.mxu0 %v2589_v9  ;;  %1094 = vmatprep.mubr.bf16.mxu1 %v2591_v10 }
 0x2b1   : > { %1031 = vmatmul.mubr.bf16.gmra.mrb[20].mxu0 %v2593_v11  ;;  %1095 = vmatmul.mubr.bf16.gmra.mrb[20].mxu1 %v2594_v12 }
 0x2b2   : > { %1038 = vmatprep.mubr.bf16.mxu0 %v2595_v13  ;;  %1102 = vmatprep.mubr.bf16.mxu1 %v2597_v14 }
 0x2b9   : > { %1039 = vmatmul.mubr.bf16.gmra.mrb[24].mxu0 %v2599_v15  ;;  %1103 = vmatmul.mubr.bf16.gmra.mrb[24].mxu1 %v2600_v17 }
 0x2ba   : > { %1046 = vmatprep.mubr.bf16.mxu0 %v2601_v18  ;;  %1110 = vmatprep.mubr.bf16.mxu1 %v2603_v19  ;;  %v1155_v19 = vld [vmem:[#allocation3 + $0x20] sm:$0xff] }
 0x2c1   : > { %1047 = vmatmul.mubr.bf16.gmra.mrb[28].mxu0 %v2605_v20  ;;  %1111 = vmatmul.mubr.bf16.gmra.mrb[28].mxu1 %v2606_v21  ;;  %v1171_v20 = vld [vmem:[#allocation3 + $0xa0] sm:$0xff] }
 0x35c   : > { %v2079_v22 = vpop.f32.mrb[0].mxu0  ;;  %v2127_v23 = vpop.f32.mrb[0].mxu1 }
 0x35d   : > { %v2080_v24 = vpop.f32.mrb[1].mxu0  ;;  %v2128_v26 = vpop.f32.mrb[1].mxu1 }
 0x35e   : > { %v2081_v27 = vadd.f32 %v2080_v24, %v2079_v22  ;;  %v2129_v28 = vadd.f32 %v2128_v26, %v2127_v23  ;;  %v2082_v29 = vpop.f32.mrb[2].mxu0  ;;  %v2130_v30 = vpop.f32.mrb[2].mxu1 }
 0x35f   : > { %v2083_v33 = vpop.f32.mrb[3].mxu0  ;;  %v2131_v34 = vpop.f32.mrb[3].mxu1 }
 0x360   : > { %v1185_v35 = vmul.f32 %v2081_v27, %v3044_v25  ;;  %v1201_v36 = vmul.f32 %v2129_v28, %v3044_v25  ;;  %v2084_v37 = vadd.f32 %v2083_v33, %v2082_v29  ;;  %v2132_v38 = vadd.f32 %v2131_v34, %v2130_v30  ;;  %v1172_v33 = vld [vmem:[#allocation3 + $0xa8] sm:$0xff] }
 0x362   : > { %v1217_v40 = vadd.f32 %v1185_v35, %v1151_v31  ;;  %v1233_v50 = vadd.f32 %v1201_v36, %v1167_v32  ;;  %v1119_v52 = vpack.c.bf16 %v2084_v37, %v2081_v27  ;;  %v1186_v41 = vmul.f32 %v2084_v37, %v3044_v25 }
 0x363   : > { %v1127_v43 = vpack.c.bf16 %v2132_v38, %v2129_v28  ;;  %v1202_v44 = vmul.f32 %v2132_v38, %v3044_v25  ;;  %v1156_v28 = vld [vmem:[#allocation3 + $0x28] sm:$0xff] }
 0x364   : > { %1249 = vst [vmem:[#allocation3] sm:$0xff] %v1217_v40  ;;  %1265 = vst [vmem:[#allocation3 + $0x80] sm:$0xff] %v1233_v50  ;;  %v1218_v45 = vadd.f32 %v1186_v41, %v1152_v39  ;;  %v2085_v46 = vpop.f32.mrb[4].mxu0  ;;  %v2133_v47 = vpop.f32.mrb[4].mxu1 }
 0x365   : > { %1135 = vst [vmem:[#allocation2] sm:$0xff] %v1119_v52  ;;  %1143 = vst [vmem:[#allocation2 + $0x40] sm:$0xff] %v1127_v43  ;;  %v1234_v48 = vadd.f32 %v1202_v44, %v1168_v42  ;;  %v2086_v49 = vpop.f32.mrb[5].mxu0  ;;  %v2134_v51 = vpop.f32.mrb[5].mxu1  ;;  %v1157_v44 = vld [vmem:[#allocation3 + $0x30] sm:$0xff] }
 0x366   : > { %1250 = vst [vmem:[#allocation3 + $0x8] sm:$0xff] %v1218_v45  ;;  %v2087_v53 = vadd.f32 %v2086_v49, %v2085_v46  ;;  %v2135_v54 = vadd.f32 %v2134_v51, %v2133_v47  ;;  %v2088_v16 = vpop.f32.mrb[6].mxu0  ;;  %v2136_v55 = vpop.f32.mrb[6].mxu1  ;;  %v1173_v45 = vld [vmem:[#allocation3 + $0xb0] sm:$0xff] }
 0x367   : > { %1266 = vst [vmem:[#allocation3 + $0x88] sm:$0xff] %v1234_v48  ;;  %v2089_v58 = vpop.f32.mrb[7].mxu0  ;;  %v2137_v59 = vpop.f32.mrb[7].mxu1 }
 0x368   : > { %v1187_v60 = vmul.f32 %v2087_v53, %v3044_v25  ;;  %v1203_v61 = vmul.f32 %v2135_v54, %v3044_v25  ;;  %v2090_v62 = vadd.f32 %v2089_v58, %v2088_v16  ;;  %v2138_v63 = vadd.f32 %v2137_v59, %v2136_v55  ;;  %v1174_v58 = vld [vmem:[#allocation3 + $0xb8] sm:$0xff] }
 0x36a   : > { %v1219_v1 = vadd.f32 %v1187_v60, %v1153_v56  ;;  %v1235_v2 = vadd.f32 %v1203_v61, %v1169_v57  ;;  %v1120_v3 = vpack.c.bf16 %v2090_v62, %v2087_v53  ;;  %v1188_v4 = vmul.f32 %v2090_v62, %v3044_v25 }
 0x36b   : > { %v1128_v6 = vpack.c.bf16 %v2138_v63, %v2135_v54  ;;  %v1204_v7 = vmul.f32 %v2138_v63, %v3044_v25  ;;  %v1158_v54 = vld [vmem:[#allocation3 + $0x38] sm:$0xff] }
 0x36c   : > { %1251 = vst [vmem:[#allocation3 + $0x10] sm:$0xff] %v1219_v1  ;;  %1267 = vst [vmem:[#allocation3 + $0x90] sm:$0xff] %v1235_v2  ;;  %v1220_v8 = vadd.f32 %v1188_v4, %v1154_v0  ;;  %v2091_v9 = vpop.f32.mrb[8].mxu0  ;;  %v2139_v10 = vpop.f32.mrb[8].mxu1 }
 0x36d   : > { %1136 = vst [vmem:[#allocation2 + $0x8] sm:$0xff] %v1120_v3  ;;  %1144 = vst [vmem:[#allocation2 + $0x48] sm:$0xff] %v1128_v6  ;;  %v1236_v11 = vadd.f32 %v1204_v7, %v1170_v5  ;;  %v2092_v12 = vpop.f32.mrb[9].mxu0  ;;  %v2140_v13 = vpop.f32.mrb[9].mxu1  ;;  %v1159_v7 = vld [vmem:[#allocation3 + $0x40] sm:$0xff] }
 0x36e   : > { %1252 = vst [vmem:[#allocation3 + $0x18] sm:$0xff] %v1220_v8  ;;  %v2093_v14 = vadd.f32 %v2092_v12, %v2091_v9  ;;  %v2141_v15 = vadd.f32 %v2140_v13, %v2139_v10  ;;  %v2094_v17 = vpop.f32.mrb[10].mxu0  ;;  %v2142_v18 = vpop.f32.mrb[10].mxu1  ;;  %v1175_v8 = vld [vmem:[#allocation3 + $0xc0] sm:$0xff] }
 0x36f   : > { %1268 = vst [vmem:[#allocation3 + $0x98] sm:$0xff] %v1236_v11  ;;  %v2095_v21 = vpop.f32.mrb[11].mxu0  ;;  %v2143_v22 = vpop.f32.mrb[11].mxu1 }
 0x370   : > { %v1189_v23 = vmul.f32 %v2093_v14, %v3044_v25  ;;  %v1205_v24 = vmul.f32 %v2141_v15, %v3044_v25  ;;  %v2096_v26 = vadd.f32 %v2095_v21, %v2094_v17  ;;  %v2144_v27 = vadd.f32 %v2143_v22, %v2142_v18  ;;  %v1176_v21 = vld [vmem:[#allocation3 + $0xc8] sm:$0xff] }
 0x372   : > { %v1221_v29 = vadd.f32 %v1189_v23, %v1155_v19  ;;  %v1237_v30 = vadd.f32 %v1205_v24, %v1171_v20  ;;  %v1121_v31 = vpack.c.bf16 %v2096_v26, %v2093_v14  ;;  %v1190_v32 = vmul.f32 %v2096_v26, %v3044_v25 }
 0x373   : > { %v1129_v34 = vpack.c.bf16 %v2144_v27, %v2141_v15  ;;  %v1206_v35 = vmul.f32 %v2144_v27, %v3044_v25  ;;  %v1160_v15 = vld [vmem:[#allocation3 + $0x48] sm:$0xff] }
 0x374   : > { %1253 = vst [vmem:[#allocation3 + $0x20] sm:$0xff] %v1221_v29  ;;  %1269 = vst [vmem:[#allocation3 + $0xa0] sm:$0xff] %v1237_v30  ;;  %v1222_v36 = vadd.f32 %v1190_v32, %v1156_v28  ;;  %v2097_v37 = vpop.f32.mrb[12].mxu0  ;;  %v2145_v38 = vpop.f32.mrb[12].mxu1 }
 0x375   : > { %1137 = vst [vmem:[#allocation2 + $0x10] sm:$0xff] %v1121_v31  ;;  %1145 = vst [vmem:[#allocation2 + $0x50] sm:$0xff] %v1129_v34  ;;  %v1238_v39 = vadd.f32 %v1206_v35, %v1172_v33  ;;  %v2098_v40 = vpop.f32.mrb[13].mxu0  ;;  %v2146_v50 = vpop.f32.mrb[13].mxu1  ;;  %v1161_v35 = vld [vmem:[#allocation3 + $0x50] sm:$0xff] }
 0x376   : > { %1254 = vst [vmem:[#allocation3 + $0x28] sm:$0xff] %v1222_v36  ;;  %v2099_v52 = vadd.f32 %v2098_v40, %v2097_v37  ;;  %v2147_v41 = vadd.f32 %v2146_v50, %v2145_v38  ;;  %v2100_v42 = vpop.f32.mrb[14].mxu0  ;;  %v2148_v43 = vpop.f32.mrb[14].mxu1  ;;  %v1177_v36 = vld [vmem:[#allocation3 + $0xd0] sm:$0xff] }
 0x377   : > { %1270 = vst [vmem:[#allocation3 + $0xa8] sm:$0xff] %v1238_v39  ;;  %v2101_v46 = vpop.f32.mrb[15].mxu0  ;;  %v2149_v47 = vpop.f32.mrb[15].mxu1 }
 0x378   : > { %v1191_v48 = vmul.f32 %v2099_v52, %v3044_v25  ;;  %v1207_v49 = vmul.f32 %v2147_v41, %v3044_v25  ;;  %v2102_v51 = vadd.f32 %v2101_v46, %v2100_v42  ;;  %v2150_v53 = vadd.f32 %v2149_v47, %v2148_v43  ;;  %v1178_v46 = vld [vmem:[#allocation3 + $0xd8] sm:$0xff] }
 0x37a   : > { %v1223_v16 = vadd.f32 %v1191_v48, %v1157_v44  ;;  %v1239_v55 = vadd.f32 %v1207_v49, %v1173_v45  ;;  %v1122_v56 = vpack.c.bf16 %v2102_v51, %v2099_v52  ;;  %v1192_v57 = vmul.f32 %v2102_v51, %v3044_v25 }
 0x37b   : > { %v1130_v59 = vpack.c.bf16 %v2150_v53, %v2147_v41  ;;  %v1208_v60 = vmul.f32 %v2150_v53, %v3044_v25  ;;  %v1162_v41 = vld [vmem:[#allocation3 + $0x58] sm:$0xff] }
 0x37c   : > { %1255 = vst [vmem:[#allocation3 + $0x30] sm:$0xff] %v1223_v16  ;;  %1271 = vst [vmem:[#allocation3 + $0xb0] sm:$0xff] %v1239_v55  ;;  %v1224_v61 = vadd.f32 %v1192_v57, %v1158_v54  ;;  %v2103_v62 = vpop.f32.mrb[16].mxu0  ;;  %v2151_v63 = vpop.f32.mrb[16].mxu1 }
 0x37d   : > { %1138 = vst [vmem:[#allocation2 + $0x18] sm:$0xff] %v1122_v56  ;;  %1146 = vst [vmem:[#allocation2 + $0x58] sm:$0xff] %v1130_v59  ;;  %v1240_v0 = vadd.f32 %v1208_v60, %v1174_v58  ;;  %v2104_v1 = vpop.f32.mrb[17].mxu0  ;;  %v2152_v2 = vpop.f32.mrb[17].mxu1  ;;  %v1163_v60 = vld [vmem:[#allocation3 + $0x60] sm:$0xff] }
 0x37e   : > { %1256 = vst [vmem:[#allocation3 + $0x38] sm:$0xff] %v1224_v61  ;;  %v2105_v3 = vadd.f32 %v2104_v1, %v2103_v62  ;;  %v2153_v4 = vadd.f32 %v2152_v2, %v2151_v63  ;;  %v2106_v5 = vpop.f32.mrb[18].mxu0  ;;  %v2154_v6 = vpop.f32.mrb[18].mxu1  ;;  %v1179_v61 = vld [vmem:[#allocation3 + $0xe0] sm:$0xff] }
 0x37f   : > { %1272 = vst [vmem:[#allocation3 + $0xb8] sm:$0xff] %v1240_v0  ;;  %v2107_v9 = vpop.f32.mrb[19].mxu0  ;;  %v2155_v10 = vpop.f32.mrb[19].mxu1 }
 0x380   : > { %v1193_v11 = vmul.f32 %v2105_v3, %v3044_v25  ;;  %v1209_v12 = vmul.f32 %v2153_v4, %v3044_v25  ;;  %v2108_v13 = vadd.f32 %v2107_v9, %v2106_v5  ;;  %v2156_v14 = vadd.f32 %v2155_v10, %v2154_v6  ;;  %v1180_v9 = vld [vmem:[#allocation3 + $0xe8] sm:$0xff] }
 0x382   : > { %v1225_v17 = vadd.f32 %v1193_v11, %v1159_v7  ;;  %v1241_v18 = vadd.f32 %v1209_v12, %v1175_v8  ;;  %v1123_v19 = vpack.c.bf16 %v2108_v13, %v2105_v3  ;;  %v1194_v20 = vmul.f32 %v2108_v13, %v3044_v25 }
 0x383   : > { %v1131_v22 = vpack.c.bf16 %v2156_v14, %v2153_v4  ;;  %v1210_v23 = vmul.f32 %v2156_v14, %v3044_v25  ;;  %v1164_v4 = vld [vmem:[#allocation3 + $0x68] sm:$0xff] }
 0x384   : > { %1257 = vst [vmem:[#allocation3 + $0x40] sm:$0xff] %v1225_v17  ;;  %1273 = vst [vmem:[#allocation3 + $0xc0] sm:$0xff] %v1241_v18  ;;  %v1226_v24 = vadd.f32 %v1194_v20, %v1160_v15  ;;  %v2109_v26 = vpop.f32.mrb[20].mxu0  ;;  %v2157_v27 = vpop.f32.mrb[20].mxu1 }
 0x385   : > { %1139 = vst [vmem:[#allocation2 + $0x20] sm:$0xff] %v1123_v19  ;;  %1147 = vst [vmem:[#allocation2 + $0x60] sm:$0xff] %v1131_v22  ;;  %v1242_v28 = vadd.f32 %v1210_v23, %v1176_v21  ;;  %v2110_v29 = vpop.f32.mrb[21].mxu0  ;;  %v2158_v30 = vpop.f32.mrb[21].mxu1  ;;  %v1165_v23 = vld [vmem:[#allocation3 + $0x70] sm:$0xff] }
 0x386   : > { %1258 = vst [vmem:[#allocation3 + $0x48] sm:$0xff] %v1226_v24  ;;  %v2111_v31 = vadd.f32 %v2110_v29, %v2109_v26  ;;  %v2159_v32 = vadd.f32 %v2158_v30, %v2157_v27  ;;  %v2112_v33 = vpop.f32.mrb[22].mxu0  ;;  %v2160_v34 = vpop.f32.mrb[22].mxu1  ;;  %v1181_v24 = vld [vmem:[#allocation3 + $0xf0] sm:$0xff] }
 0x387   : > { %1274 = vst [vmem:[#allocation3 + $0xc8] sm:$0xff] %v1242_v28  ;;  %v2113_v37 = vpop.f32.mrb[23].mxu0  ;;  %v2161_v38 = vpop.f32.mrb[23].mxu1 }
 0x388   : > { %v1195_v39 = vmul.f32 %v2111_v31, %v3044_v25  ;;  %v1211_v40 = vmul.f32 %v2159_v32, %v3044_v25  ;;  %v2114_v50 = vadd.f32 %v2113_v37, %v2112_v33  ;;  %v2162_v52 = vadd.f32 %v2161_v38, %v2160_v34  ;;  %v1182_v37 = vld [vmem:[#allocation3 + $0xf8] sm:$0xff] }
 0x38a   : > { %v1227_v42 = vadd.f32 %v1195_v39, %v1161_v35  ;;  %v1243_v43 = vadd.f32 %v1211_v40, %v1177_v36  ;;  %v1124_v44 = vpack.c.bf16 %v2114_v50, %v2111_v31  ;;  %v1196_v45 = vmul.f32 %v2114_v50, %v3044_v25 }
 0x38b   : > { %v1132_v47 = vpack.c.bf16 %v2162_v52, %v2159_v32  ;;  %v1212_v48 = vmul.f32 %v2162_v52, %v3044_v25  ;;  %v1166_v32 = vld [vmem:[#allocation3 + $0x78] sm:$0xff]  ;;  %v1321_v52 = vld [vmem:[#allocation2 + $0x40] sm:$0xff] (%p745_p7) }
 0x38c   : > { %1259 = vst [vmem:[#allocation3 + $0x50] sm:$0xff] %v1227_v42  ;;  %1275 = vst [vmem:[#allocation3 + $0xd0] sm:$0xff] %v1243_v43  ;;  %v1228_v49 = vadd.f32 %v1196_v45, %v1162_v41  ;;  %v2115_v51 = vpop.f32.mrb[24].mxu0  ;;  %v2163_v53 = vpop.f32.mrb[24].mxu1  ;;  %v1313_v41 = vld [vmem:[#allocation2] sm:$0xff] (%p745_p7)  ;;  %v1322_v42 = vld [vmem:[#allocation2 + $0x48] sm:$0xff] (%p745_p7)  ;;  %2175 = vmatprep.subr.bf16.mxu0 (%p745_p7), %v1321_v52  ;;  %2527 = vmatprep.subr.bf16.mxu1 (%p745_p7), %v1321_v52 }
 0x38d   : > { %1140 = vst [vmem:[#allocation2 + $0x28] sm:$0xff] %v1124_v44  ;;  %1148 = vst [vmem:[#allocation2 + $0x68] sm:$0xff] %v1132_v47  ;;  %v1244_v54 = vadd.f32 %v1212_v48, %v1178_v46  ;;  %v2116_v16 = vpop.f32.mrb[25].mxu0  ;;  %v2164_v55 = vpop.f32.mrb[25].mxu1  ;;  %2176 = vmatpush3.bf16.msra.mxu0 (%p745_p7), %v1313_v41  ;;  %2535 = vmatpush3.bf16.msra.mxu1 (%p745_p7), %v1313_v41  ;;  %v1323_v43 = vld [vmem:[#allocation2 + $0x50] sm:$0xff] (%p745_p7)  ;;  %v1324_v47 = vld [vmem:[#allocation2 + $0x58] sm:$0xff] (%p745_p7) }
 0x38e   : > { %1260 = vst [vmem:[#allocation3 + $0x58] sm:$0xff] %v1228_v49  ;;  %v2117_v56 = vadd.f32 %v2116_v16, %v2115_v51  ;;  %v2165_v57 = vadd.f32 %v2164_v55, %v2163_v53  ;;  %v2118_v58 = vpop.f32.mrb[26].mxu0  ;;  %v2166_v59 = vpop.f32.mrb[26].mxu1  ;;  %2177 = vmatprep.subr.bf16.mxu0 (%p745_p7), %v1322_v42  ;;  %2528 = vmatprep.subr.bf16.mxu1 (%p745_p7), %v1322_v42  ;;  %v2609_v44 = vld [vmem:[#allocation9 + $0x4] ss:$8 sps:$4 sm:$0xff] (%p745_p7)   ;;  %v1315_v45 = vld [vmem:[#allocation2 + $0x10] sm:$0xff] (%p745_p7) }
 0x38f   : > { %1276 = vst [vmem:[#allocation3 + $0xd8] sm:$0xff] %v1244_v54  ;;  %v2119_v62 = vpop.f32.mrb[27].mxu0  ;;  %v2167_v63 = vpop.f32.mrb[27].mxu1  ;;  %v2612_v46 = vld [vmem:[#allocation9 + $0x84] ss:$8 sps:$4 sm:$0xff] (%p745_p7)   ;;  %1521 = vmatprep.mubr.bf16.mxu0 (%p745_p7), %v2609_v44  ;;  %v1316_v48 = vld [vmem:[#allocation2 + $0x18] sm:$0xff] (%p745_p7) }
 0x390   : > { %v1197_v0 = vmul.f32 %v2117_v56, %v3044_v25  ;;  %v1213_v1 = vmul.f32 %v2165_v57, %v3044_v25  ;;  %v2120_v2 = vadd.f32 %v2119_v62, %v2118_v58  ;;  %v2168_v3 = vadd.f32 %v2167_v63, %v2166_v59  ;;  %1585 = vmatprep.mubr.bf16.mxu1 (%p745_p7), %v2612_v46  ;;  %v1325_v49 = vld [vmem:[#allocation2 + $0x60] sm:$0xff] (%p745_p7)  ;;  %v2617_v62 = vld [vmem:[#allocation9 + $0x10] ss:$8 sps:$4 sm:$0xff] (%p745_p7)   ;;  %v1651_v41 = vld [vmem:[#allocation3 + $0x8] sm:$0xff] (%p745_p7) }
 0x391   :  { %v1317_v51 = vld [vmem:[#allocation2 + $0x20] sm:$0xff] (%p745_p7)  ;;  %v2618_v63 = vld [vmem:[#allocation9 + $0x90] ss:$8 sps:$4 sm:$0xff] (%p745_p7)   ;;  %v1667_v42 = vld [vmem:[#allocation3 + $0x88] sm:$0xff] (%p745_p7) }
 0x392   : > { %v1229_v5 = vadd.f32 %v1197_v0, %v1163_v60  ;;  %v1245_v6 = vadd.f32 %v1213_v1, %v1179_v61  ;;  %v1125_v7 = vpack.c.bf16 %v2120_v2, %v2117_v56  ;;  %v1198_v8 = vmul.f32 %v2120_v2, %v3044_v25  ;;  %v2607_v58 = vld [vmem:[#allocation9] ss:$8 sps:$4 sm:$0xff] (%p745_p7)   ;;  %v2613_v60 = vld [vmem:[#allocation9 + $0x14] ss:$8 sps:$4 sm:$0xff] (%p745_p7)   ;;  %v2619_v0 = vld [vmem:[#allocation9 + $0x24] ss:$8 sps:$4 sm:$0xff] (%p745_p7)  }
 0x393   : > { %v1133_v10 = vpack.c.bf16 %v2168_v3, %v2165_v57  ;;  %v1214_v11 = vmul.f32 %v2168_v3, %v3044_v25  ;;  %v2610_v59 = vld [vmem:[#allocation9 + $0x80] ss:$8 sps:$4 sm:$0xff] (%p745_p7)   ;;  %v2615_v61 = vld [vmem:[#allocation9 + $0x94] ss:$8 sps:$4 sm:$0xff] (%p745_p7)   ;;  %v2621_v1 = vld [vmem:[#allocation9 + $0xa4] ss:$8 sps:$4 sm:$0xff] (%p745_p7)  }
 0x394   : > { %1261 = vst [vmem:[#allocation3 + $0x60] sm:$0xff] %v1229_v5  ;;  %1277 = vst [vmem:[#allocation3 + $0xe0] sm:$0xff] %v1245_v6  ;;  %v1230_v12 = vadd.f32 %v1198_v8, %v1164_v4  ;;  %v2121_v13 = vpop.f32.mrb[28].mxu0  ;;  %v2169_v14 = vpop.f32.mrb[28].mxu1  ;;  %v1326_v53 = vld [vmem:[#allocation2 + $0x68] sm:$0xff] (%p745_p7)  ;;  %v1780_v46 = vld [vmem:[#allocation6] sm:$0xff] (%p745_p7) }
 0x395   : > { %1141 = vst [vmem:[#allocation2 + $0x30] sm:$0xff] %v1125_v7  ;;  %1149 = vst [vmem:[#allocation2 + $0x70] sm:$0xff] %v1133_v10  ;;  %v1246_v15 = vadd.f32 %v1214_v11, %v1180_v9  ;;  %v2122_v17 = vpop.f32.mrb[29].mxu0  ;;  %v2170_v18 = vpop.f32.mrb[29].mxu1  ;;  %v1318_v54 = vld [vmem:[#allocation2 + $0x28] sm:$0xff] (%p745_p7) }
 0x396   : > { %1262 = vst [vmem:[#allocation3 + $0x68] sm:$0xff] %v1230_v12  ;;  %v2123_v19 = vadd.f32 %v2122_v17, %v2121_v13  ;;  %v2171_v20 = vadd.f32 %v2170_v18, %v2169_v14  ;;  %v2124_v21 = vpop.f32.mrb[30].mxu0  ;;  %v2172_v22 = vpop.f32.mrb[30].mxu1  ;;  %v2623_v2 = vld [vmem:[#allocation9 + $0x20] ss:$8 sps:$4 sm:$0xff] (%p745_p7)  }
 0x397   : > { %1278 = vst [vmem:[#allocation3 + $0xe8] sm:$0xff] %v1246_v15  ;;  %v2125_v26 = vpop.f32.mrb[31].mxu0  ;;  %v2173_v27 = vpop.f32.mrb[31].mxu1  ;;  %v2624_v3 = vld [vmem:[#allocation9 + $0xa0] ss:$8 sps:$4 sm:$0xff] (%p745_p7)  }
 0x398   : > { %v1199_v28 = vmul.f32 %v2123_v19, %v3044_v25  ;;  %v1215_v29 = vmul.f32 %v2171_v20, %v3044_v25  ;;  %v2126_v30 = vadd.f32 %v2125_v26, %v2124_v21  ;;  %v2174_v31 = vadd.f32 %v2173_v27, %v2172_v22  ;;  %v2625_v4 = vld [vmem:[#allocation9 + $0x34] ss:$8 sps:$4 sm:$0xff] (%p745_p7)   ;;  %v2629_v6 = vld [vmem:[#allocation9 + $0x30] ss:$8 sps:$4 sm:$0xff] (%p745_p7)   ;;  %v2631_v8 = vld [vmem:[#allocation9 + $0x44] ss:$8 sps:$4 sm:$0xff] (%p745_p7)  }
 0x399   :  { %747 = sbr.rel (!%p745_p7) target bundleno = 616 (0x268), region = 67  ;;  %v2627_v5 = vld [vmem:[#allocation9 + $0xb4] ss:$8 sps:$4 sm:$0xff] (%p745_p7)   ;;  %v2630_v7 = vld [vmem:[#allocation9 + $0xb0] ss:$8 sps:$4 sm:$0xff] (%p745_p7)  }
 0x39a   : > { %v1231_v33 = vadd.f32 %v1199_v28, %v1165_v23  ;;  %v1247_v34 = vadd.f32 %v1215_v29, %v1181_v24  ;;  %v1126_v35 = vpack.c.bf16 %v2126_v30, %v2123_v19  ;;  %v1200_v36 = vmul.f32 %v2126_v30, %v3044_v25  ;;  %v2633_v9 = vld [vmem:[#allocation9 + $0xc4] ss:$8 sps:$4 sm:$0xff] (%p745_p7)   ;;  %v2635_v10 = vld [vmem:[#allocation9 + $0x40] ss:$8 sps:$4 sm:$0xff] (%p745_p7)   ;;  %v2637_v12 = vld [vmem:[#allocation9 + $0x54] ss:$8 sps:$4 sm:$0xff] (%p745_p7)  }
 0x39b   : > { %v1134_v38 = vpack.c.bf16 %v2174_v31, %v2171_v20  ;;  %v1216_v39 = vmul.f32 %v2174_v31, %v3044_v25  ;;  %v1314_v25 = vld [vmem:[#allocation2 + $0x8] sm:$0xff] (%p745_p7)  ;;  %v2639_v13 = vld [vmem:[#allocation9 + $0xd4] ss:$8 sps:$4 sm:$0xff] (%p745_p7)   ;;  %v2641_v14 = vld [vmem:[#allocation9 + $0x50] ss:$8 sps:$4 sm:$0xff] (%p745_p7)   ;;  %v3082_v29 = vstv (%p745_p7), %s1966_s16 }
 0x39c   : > { %1263 = vst [vmem:[#allocation3 + $0x70] sm:$0xff] %v1231_v33  ;;  %1279 = vst [vmem:[#allocation3 + $0xf0] sm:$0xff] %v1247_v34  ;;  %v1232_v40 = vadd.f32 %v1200_v36, %v1166_v32  ;;  %2178 = vmatpush3.bf16.msra.mxu0 (%p745_p7), %v1314_v25  ;;  %2536 = vmatpush3.bf16.msra.mxu1 (%p745_p7), %v1314_v25  ;;  %v1327_v16 = vld [vmem:[#allocation2 + $0x70] sm:$0xff] (%p745_p7)  ;;  %v2636_v11 = vld [vmem:[#allocation9 + $0xc0] ss:$8 sps:$4 sm:$0xff] (%p745_p7)  }
 0x39d   : > { %1142 = vst [vmem:[#allocation2 + $0x38] sm:$0xff] %v1126_v35  ;;  %1150 = vst [vmem:[#allocation2 + $0x78] sm:$0xff] %v1134_v38  ;;  %v1248_v50 = vadd.f32 %v1216_v39, %v1182_v37  ;;  %2179 = vmatprep.subr.bf16.mxu0 (%p745_p7), %v1323_v43  ;;  %2529 = vmatprep.subr.bf16.mxu1 (%p745_p7), %v1323_v43  ;;  %v1319_v55 = vld [vmem:[#allocation2 + $0x30] sm:$0xff] (%p745_p7)  ;;  %v2643_v17 = vld [vmem:[#allocation9 + $0x64] ss:$8 sps:$4 sm:$0xff] (%p745_p7)  }
 0x39e   : > { %1264 = vst [vmem:[#allocation3 + $0x78] sm:$0xff] %v1232_v40  ;;  %v2642_v15 = vld [vmem:[#allocation9 + $0xd0] ss:$8 sps:$4 sm:$0xff] (%p745_p7)   ;;  %v2645_v18 = vld [vmem:[#allocation9 + $0xe4] ss:$8 sps:$4 sm:$0xff] (%p745_p7)  }
 0x39f   : > { %1280 = vst [vmem:[#allocation3 + $0xf8] sm:$0xff] %v1248_v50  ;;  %v2647_v19 = vld [vmem:[#allocation9 + $0x60] ss:$8 sps:$4 sm:$0xff] (%p745_p7)   ;;  %v2649_v21 = vld [vmem:[#allocation9 + $0x74] ss:$8 sps:$4 sm:$0xff] (%p745_p7)  }
 0x3a0   :  { %2180 = vmatpush3.bf16.msra.mxu0 %v1315_v45  ;;  %2537 = vmatpush3.bf16.msra.mxu1 %v1315_v45  ;;  %v2648_v20 = vld [vmem:[#allocation9 + $0xe0] ss:$8 sps:$4 sm:$0xff]   ;;  %v2651_v22 = vld [vmem:[#allocation9 + $0xf4] ss:$8 sps:$4 sm:$0xff]   ;;  %v2653_v23 = vld [vmem:[#allocation9 + $0x70] ss:$8 sps:$4 sm:$0xff]  }
 0x3a1   :  { %2181 = vmatprep.subr.bf16.mxu0 %v1324_v47  ;;  %2530 = vmatprep.subr.bf16.mxu1 %v1324_v47  ;;  %v2654_v24 = vld [vmem:[#allocation9 + $0xf0] ss:$8 sps:$4 sm:$0xff]   ;;  %v1650_v35 = vld [vmem:[#allocation3] sm:$0xff] }
 0x3a2   :  { %v1666_v36 = vld [vmem:[#allocation3 + $0x80] sm:$0xff] }
 0x3a3   :  { %v1796_v47 = vld [vmem:[#allocation6 + $0x80] sm:$0xff] }
 0x3a4   :  { %2182 = vmatpush3.bf16.msra.mxu0 %v1316_v48  ;;  %2538 = vmatpush3.bf16.msra.mxu1 %v1316_v48  ;;  %v1328_v56 = vld [vmem:[#allocation2 + $0x78] sm:$0xff] }
 0x3a5   :  { %2183 = vmatprep.subr.bf16.mxu0 %v1325_v49  ;;  %2531 = vmatprep.subr.bf16.mxu1 %v1325_v49  ;;  %v1320_v57 = vld [vmem:[#allocation2 + $0x38] sm:$0xff] }
 0x3a8   :  { %2184 = vmatpush3.bf16.msra.mxu0 %v1317_v51  ;;  %2539 = vmatpush3.bf16.msra.mxu1 %v1317_v51 }
 0x3a9   :  { %2185 = vmatprep.subr.bf16.mxu0 %v1326_v53  ;;  %2532 = vmatprep.subr.bf16.mxu1 %v1326_v53 }
 0x3ac   :  { %2186 = vmatpush3.bf16.msra.mxu0 %v1318_v54  ;;  %2540 = vmatpush3.bf16.msra.mxu1 %v1318_v54 }
 0x3ad   :  { %2187 = vmatprep.subr.bf16.mxu0 %v1327_v16  ;;  %2533 = vmatprep.subr.bf16.mxu1 %v1327_v16 }
 0x3b0   :  { %2188 = vmatpush3.bf16.msra.mxu0 %v1319_v55  ;;  %2541 = vmatpush3.bf16.msra.mxu1 %v1319_v55  ;;  %v1781_v55 = vld [vmem:[#allocation6 + $0x8] sm:$0xff] }
 0x3b1   :  { %2189 = vmatprep.subr.bf16.mxu0 %v1328_v56  ;;  %2534 = vmatprep.subr.bf16.mxu1 %v1328_v56  ;;  %v1797_v56 = vld [vmem:[#allocation6 + $0x88] sm:$0xff] }
 0x3b4   :  { %2190 = vmatpush3.bf16.msra.mxu0 %v1320_v57  ;;  %2542 = vmatpush3.bf16.msra.mxu1 %v1320_v57 }
 0x3b7   :  { %1522 = vmatmul.mubr.bf16.vlgmr.msra.gmra.mrb[0].mxu0 %v2607_v58  ;;  %1586 = vmatmul.mubr.bf16.vlgmr.msra.gmra.mrb[0].mxu1 %v2610_v59 }
 0x3b8   :  { %1529 = vmatprep.mubr.bf16.mxu0 %v2613_v60  ;;  %1593 = vmatprep.mubr.bf16.mxu1 %v2615_v61 }
 0x3bf   :  { %1530 = vmatmul.mubr.bf16.gmra.mrb[4].mxu0 %v2617_v62  ;;  %1594 = vmatmul.mubr.bf16.gmra.mrb[4].mxu1 %v2618_v63 }
 0x3c0   :  { %1537 = vmatprep.mubr.bf16.mxu0 %v2619_v0  ;;  %1601 = vmatprep.mubr.bf16.mxu1 %v2621_v1 }
 0x3c7   :  { %1538 = vmatmul.mubr.bf16.gmra.mrb[8].mxu0 %v2623_v2  ;;  %1602 = vmatmul.mubr.bf16.gmra.mrb[8].mxu1 %v2624_v3 }
 0x3c8   :  { %1545 = vmatprep.mubr.bf16.mxu0 %v2625_v4  ;;  %1609 = vmatprep.mubr.bf16.mxu1 %v2627_v5 }
 0x3cf   :  { %1546 = vmatmul.mubr.bf16.gmra.mrb[12].mxu0 %v2629_v6  ;;  %1610 = vmatmul.mubr.bf16.gmra.mrb[12].mxu1 %v2630_v7  ;;  %v1652_v7 = vld [vmem:[#allocation3 + $0x10] sm:$0xff] }
 0x3d0   :  { %1553 = vmatprep.mubr.bf16.mxu0 %v2631_v8  ;;  %1617 = vmatprep.mubr.bf16.mxu1 %v2633_v9  ;;  %v1668_v8 = vld [vmem:[#allocation3 + $0x90] sm:$0xff] }
 0x3d7   :  { %1554 = vmatmul.mubr.bf16.gmra.mrb[16].mxu0 %v2635_v10  ;;  %1618 = vmatmul.mubr.bf16.gmra.mrb[16].mxu1 %v2636_v11 }
 0x3d8   :  { %1561 = vmatprep.mubr.bf16.mxu0 %v2637_v12  ;;  %1625 = vmatprep.mubr.bf16.mxu1 %v2639_v13  ;;  %v1653_v13 = vld [vmem:[#allocation3 + $0x18] sm:$0xff] }
 0x3df   :  { %1562 = vmatmul.mubr.bf16.gmra.mrb[20].mxu0 %v2641_v14  ;;  %1626 = vmatmul.mubr.bf16.gmra.mrb[20].mxu1 %v2642_v15  ;;  %v1669_v14 = vld [vmem:[#allocation3 + $0x98] sm:$0xff] }
 0x3e0   :  { %1569 = vmatprep.mubr.bf16.mxu0 %v2643_v17  ;;  %1633 = vmatprep.mubr.bf16.mxu1 %v2645_v18 }
 0x3e7   :  { %1570 = vmatmul.mubr.bf16.gmra.mrb[24].mxu0 %v2647_v19  ;;  %1634 = vmatmul.mubr.bf16.gmra.mrb[24].mxu1 %v2648_v20  ;;  %v1782_v20 = vld [vmem:[#allocation6 + $0x10] sm:$0xff] }
 0x3e8   :  { %1577 = vmatprep.mubr.bf16.mxu0 %v2649_v21  ;;  %1641 = vmatprep.mubr.bf16.mxu1 %v2651_v22  ;;  %v1798_v21 = vld [vmem:[#allocation6 + $0x90] sm:$0xff] }
 0x3ef   :  { %1578 = vmatmul.mubr.bf16.gmra.mrb[28].mxu0 %v2653_v23  ;;  %1642 = vmatmul.mubr.bf16.gmra.mrb[28].mxu1 %v2654_v24 }
 0x48a   :  { %v2191_v26 = vpop.f32.mrb[0].mxu0  ;;  %v2239_v27 = vpop.f32.mrb[0].mxu1 }
 0x48b   :  { %v2192_v28 = vpop.f32.mrb[1].mxu0  ;;  %v2240_v30 = vpop.f32.mrb[1].mxu1 }
 0x48c   :  { %v2193_v31 = vadd.f32 %v2192_v28, %v2191_v26  ;;  %v2241_v32 = vadd.f32 %v2240_v30, %v2239_v27  ;;  %v2194_v33 = vpop.f32.mrb[2].mxu0  ;;  %v2242_v34 = vpop.f32.mrb[2].mxu1  ;;  %v1783_v30 = vld [vmem:[#allocation6 + $0x18] sm:$0xff] }
 0x48d   :  { %v2195_v37 = vpop.f32.mrb[3].mxu0  ;;  %v2243_v38 = vpop.f32.mrb[3].mxu1 }
 0x48e   :  { %v1684_v39 = vmul.f32 %v2193_v31, %v3082_v29  ;;  %v1700_v40 = vmul.f32 %v2241_v32, %v3082_v29  ;;  %v2196_v50 = vadd.f32 %v2195_v37, %v2194_v33  ;;  %v2244_v52 = vadd.f32 %v2243_v38, %v2242_v34  ;;  %v1799_v31 = vld [vmem:[#allocation6 + $0x98] sm:$0xff] }
 0x490   :  { %v1716_v25 = vadd.f32 %v1684_v39, %v1650_v35  ;;  %v1732_v43 = vadd.f32 %v1700_v40, %v1666_v36  ;;  %v1685_v44 = vmul.f32 %v2196_v50, %v3082_v29  ;;  %v1701_v45 = vmul.f32 %v2244_v52, %v3082_v29  ;;  %v1654_v52 = vld [vmem:[#allocation3 + $0x20] sm:$0xff] }
 0x492   :  { %v1748_v48 = vmax.f32 %v1716_v25, 0.0  ;;  %v1764_v49 = vmax.f32 %v1732_v43, 0.0  ;;  %v1717_v51 = vadd.f32 %v1685_v44, %v1651_v41  ;;  %v1733_v53 = vadd.f32 %v1701_v45, %v1667_v42  ;;  %v2197_v54 = vpop.f32.mrb[4].mxu0  ;;  %v2245_v16 = vpop.f32.mrb[4].mxu1  ;;  %v1670_v41 = vld [vmem:[#allocation3 + $0xa0] sm:$0xff] }
 0x493   :  { %v2198_v57 = vpop.f32.mrb[5].mxu0  ;;  %v2246_v58 = vpop.f32.mrb[5].mxu1 }
 0x494   :  { %v1812_v59 = vadd.f32 %v1780_v46, %v1748_v48  ;;  %v1828_v60 = vadd.f32 %v1796_v47, %v1764_v49  ;;  %v1749_v61 = vmax.f32 %v1717_v51, 0.0  ;;  %v1765_v62 = vmax.f32 %v1733_v53, 0.0  ;;  %v2200_v63 = vpop.f32.mrb[6].mxu0  ;;  %v2248_v0 = vpop.f32.mrb[6].mxu1  ;;  %v1655_v53 = vld [vmem:[#allocation3 + $0x28] sm:$0xff] }
 0x495   :  { %v2199_v1 = vadd.f32 %v2198_v57, %v2197_v54  ;;  %v2247_v2 = vadd.f32 %v2246_v58, %v2245_v16  ;;  %v2201_v3 = vpop.f32.mrb[7].mxu0  ;;  %v2249_v4 = vpop.f32.mrb[7].mxu1  ;;  %v1671_v54 = vld [vmem:[#allocation3 + $0xa8] sm:$0xff]  ;;  %v1784_v16 = vld [vmem:[#allocation6 + $0x20] sm:$0xff] }
 0x496   :  { %1844 = vst [vmem:[#allocation14] sm:$0xff] %v1812_v59  ;;  %1860 = vst [vmem:[#allocation14 + $0x80] sm:$0xff] %v1828_v60  ;;  %v1813_v5 = vadd.f32 %v1781_v55, %v1749_v61  ;;  %v1829_v6 = vadd.f32 %v1797_v56, %v1765_v62  ;;  %v2202_v9 = vadd.f32 %v2201_v3, %v2200_v63  ;;  %v1800_v55 = vld [vmem:[#allocation6 + $0xa0] sm:$0xff] }
 0x497   :  { %v2250_v10 = vadd.f32 %v2249_v4, %v2248_v0  ;;  %v1686_v11 = vmul.f32 %v2199_v1, %v3082_v29  ;;  %v1702_v12 = vmul.f32 %v2247_v2, %v3082_v29  ;;  %v1785_v4 = vld [vmem:[#allocation6 + $0x28] sm:$0xff] }
 0x498   :  { %1845 = vst [vmem:[#allocation14 + $0x8] sm:$0xff] %v1813_v5  ;;  %1861 = vst [vmem:[#allocation14 + $0x88] sm:$0xff] %v1829_v6  ;;  %v1687_v15 = vmul.f32 %v2202_v9, %v3082_v29  ;;  %v1801_v5 = vld [vmem:[#allocation6 + $0xa8] sm:$0xff] }
 0x499   :  { %v1703_v17 = vmul.f32 %v2250_v10, %v3082_v29  ;;  %v1718_v18 = vadd.f32 %v1686_v11, %v1652_v7  ;;  %v1734_v19 = vadd.f32 %v1702_v12, %v1668_v8  ;;  %v1656_v12 = vld [vmem:[#allocation3 + $0x30] sm:$0xff] }
 0x49a   :  { %v1719_v22 = vadd.f32 %v1687_v15, %v1653_v13  ;;  %v2203_v24 = vpop.f32.mrb[8].mxu0  ;;  %v2251_v26 = vpop.f32.mrb[8].mxu1  ;;  %v1672_v13 = vld [vmem:[#allocation3 + $0xb0] sm:$0xff] }
 0x49b   :  { %v1735_v23 = vadd.f32 %v1703_v17, %v1669_v14  ;;  %v1750_v27 = vmax.f32 %v1718_v18, 0.0  ;;  %v1766_v28 = vmax.f32 %v1734_v19, 0.0  ;;  %v2204_v32 = vpop.f32.mrb[9].mxu0  ;;  %v2252_v33 = vpop.f32.mrb[9].mxu1 }
 0x49c   :  { %v1751_v34 = vmax.f32 %v1719_v22, 0.0  ;;  %v2205_v36 = vadd.f32 %v2204_v32, %v2203_v24  ;;  %v2253_v37 = vadd.f32 %v2252_v33, %v2251_v26  ;;  %v2206_v38 = vpop.f32.mrb[10].mxu0  ;;  %v2254_v39 = vpop.f32.mrb[10].mxu1  ;;  %v1673_v24 = vld [vmem:[#allocation3 + $0xb8] sm:$0xff]  ;;  %v1802_v32 = vld [vmem:[#allocation6 + $0xb0] sm:$0xff] }
 0x49d   :  { %v1767_v35 = vmax.f32 %v1735_v23, 0.0  ;;  %v1814_v40 = vadd.f32 %v1782_v20, %v1750_v27  ;;  %v1830_v50 = vadd.f32 %v1798_v21, %v1766_v28  ;;  %v2207_v42 = vpop.f32.mrb[11].mxu0  ;;  %v2255_v25 = vpop.f32.mrb[11].mxu1  ;;  %v1657_v23 = vld [vmem:[#allocation3 + $0x38] sm:$0xff] }
 0x49e   :  { %v1815_v43 = vadd.f32 %v1783_v30, %v1751_v34  ;;  %v1688_v45 = vmul.f32 %v2205_v36, %v3082_v29  ;;  %v1704_v46 = vmul.f32 %v2253_v37, %v3082_v29  ;;  %v2208_v47 = vadd.f32 %v2207_v42, %v2206_v38 }
 0x49f   :  { %v1831_v44 = vadd.f32 %v1799_v31, %v1767_v35  ;;  %1846 = vst [vmem:[#allocation14 + $0x10] sm:$0xff] %v1814_v40  ;;  %1862 = vst [vmem:[#allocation14 + $0x90] sm:$0xff] %v1830_v50  ;;  %v2256_v48 = vadd.f32 %v2255_v25, %v2254_v39  ;;  %v1786_v31 = vld [vmem:[#allocation6 + $0x30] sm:$0xff]  ;;  %v1787_v39 = vld [vmem:[#allocation6 + $0x38] sm:$0xff] }
 0x4a0   :  { %1847 = vst [vmem:[#allocation14 + $0x18] sm:$0xff] %v1815_v43  ;;  %v1720_v49 = vadd.f32 %v1688_v45, %v1654_v52  ;;  %v1736_v51 = vadd.f32 %v1704_v46, %v1670_v41  ;;  %v1689_v56 = vmul.f32 %v2208_v47, %v3082_v29  ;;  %v1803_v40 = vld [vmem:[#allocation6 + $0xb8] sm:$0xff] }
 0x4a1   :  { %1863 = vst [vmem:[#allocation14 + $0x98] sm:$0xff] %v1831_v44  ;;  %v1705_v57 = vmul.f32 %v2256_v48, %v3082_v29 }
 0x4a2   :  { %v1752_v58 = vmax.f32 %v1720_v49, 0.0  ;;  %v1768_v59 = vmax.f32 %v1736_v51, 0.0  ;;  %v2209_v60 = vpop.f32.mrb[12].mxu0  ;;  %v2257_v61 = vpop.f32.mrb[12].mxu1  ;;  %v1721_v62 = vadd.f32 %v1689_v56, %v1655_v53 }
 0x4a3   :  { %v1737_v63 = vadd.f32 %v1705_v57, %v1671_v54  ;;  %v2210_v0 = vpop.f32.mrb[13].mxu0  ;;  %v2258_v1 = vpop.f32.mrb[13].mxu1  ;;  %v1658_v54 = vld [vmem:[#allocation3 + $0x40] sm:$0xff] }
 0x4a4   :  { %v1816_v2 = vadd.f32 %v1784_v16, %v1752_v58  ;;  %v1832_v3 = vadd.f32 %v1800_v55, %v1768_v59  ;;  %v2211_v6 = vadd.f32 %v2210_v0, %v2209_v60  ;;  %v2259_v7 = vadd.f32 %v2258_v1, %v2257_v61  ;;  %v2212_v8 = vpop.f32.mrb[14].mxu0  ;;  %v2260_v9 = vpop.f32.mrb[14].mxu1  ;;  %v1674_v16 = vld [vmem:[#allocation3 + $0xc0] sm:$0xff]  ;;  %v1659_v59 = vld [vmem:[#allocation3 + $0x48] sm:$0xff] }
 0x4a5   :  { %v1753_v10 = vmax.f32 %v1721_v62, 0.0  ;;  %v1769_v11 = vmax.f32 %v1737_v63, 0.0  ;;  %v2213_v14 = vpop.f32.mrb[15].mxu0  ;;  %v2261_v15 = vpop.f32.mrb[15].mxu1  ;;  %v1675_v60 = vld [vmem:[#allocation3 + $0xc8] sm:$0xff]  ;;  %v1788_v1 = vld [vmem:[#allocation6 + $0x40] sm:$0xff] }
 0x4a6   :  { %1848 = vst [vmem:[#allocation14 + $0x20] sm:$0xff] %v1816_v2  ;;  %1864 = vst [vmem:[#allocation14 + $0xa0] sm:$0xff] %v1832_v3  ;;  %v1690_v17 = vmul.f32 %v2211_v6, %v3082_v29  ;;  %v1706_v18 = vmul.f32 %v2259_v7, %v3082_v29  ;;  %v2214_v19 = vadd.f32 %v2213_v14, %v2212_v8  ;;  %v1804_v2 = vld [vmem:[#allocation6 + $0xc0] sm:$0xff] }
 0x4a7   :  { %v2262_v20 = vadd.f32 %v2261_v15, %v2260_v9  ;;  %v1817_v21 = vadd.f32 %v1785_v4, %v1753_v10  ;;  %v1833_v22 = vadd.f32 %v1801_v5, %v1769_v11  ;;  %v1789_v9 = vld [vmem:[#allocation6 + $0x48] sm:$0xff] }
 0x4a8   :  { %v1722_v26 = vadd.f32 %v1690_v17, %v1656_v12  ;;  %v1738_v27 = vadd.f32 %v1706_v18, %v1672_v13  ;;  %v1691_v28 = vmul.f32 %v2214_v19, %v3082_v29  ;;  %v1805_v10 = vld [vmem:[#allocation6 + $0xc8] sm:$0xff] }
 0x4a9   :  { %v1707_v30 = vmul.f32 %v2262_v20, %v3082_v29  ;;  %1849 = vst [vmem:[#allocation14 + $0x28] sm:$0xff] %v1817_v21  ;;  %1865 = vst [vmem:[#allocation14 + $0xa8] sm:$0xff] %v1833_v22  ;;  %v1660_v22 = vld [vmem:[#allocation3 + $0x50] sm:$0xff] }
 0x4aa   :  { %v1754_v33 = vmax.f32 %v1722_v26, 0.0  ;;  %v1770_v34 = vmax.f32 %v1738_v27, 0.0  ;;  %v1723_v35 = vadd.f32 %v1691_v28, %v1657_v23  ;;  %v2215_v37 = vpop.f32.mrb[16].mxu0  ;;  %v2263_v38 = vpop.f32.mrb[16].mxu1  ;;  %v1676_v23 = vld [vmem:[#allocation3 + $0xd0] sm:$0xff] }
 0x4ab   :  { %v1739_v36 = vadd.f32 %v1707_v30, %v1673_v24  ;;  %v2216_v50 = vpop.f32.mrb[17].mxu0  ;;  %v2264_v52 = vpop.f32.mrb[17].mxu1 }
 0x4ac   :  { %v1818_v41 = vadd.f32 %v1786_v31, %v1754_v33  ;;  %v1834_v42 = vadd.f32 %v1802_v32, %v1770_v34  ;;  %v1755_v25 = vmax.f32 %v1723_v35, 0.0  ;;  %v2218_v44 = vpop.f32.mrb[18].mxu0  ;;  %v2266_v45 = vpop.f32.mrb[18].mxu1  ;;  %v2217_v46 = vadd.f32 %v2216_v50, %v2215_v37  ;;  %v1677_v37 = vld [vmem:[#allocation3 + $0xd8] sm:$0xff] }
 0x4ad   :  { %v1771_v43 = vmax.f32 %v1739_v36, 0.0  ;;  %v2265_v47 = vadd.f32 %v2264_v52, %v2263_v38  ;;  %v2219_v48 = vpop.f32.mrb[19].mxu0  ;;  %v2267_v49 = vpop.f32.mrb[19].mxu1  ;;  %v1661_v36 = vld [vmem:[#allocation3 + $0x58] sm:$0xff]  ;;  %v1790_v38 = vld [vmem:[#allocation6 + $0x50] sm:$0xff] }
 0x4ae   :  { %1850 = vst [vmem:[#allocation14 + $0x30] sm:$0xff] %v1818_v41  ;;  %1866 = vst [vmem:[#allocation14 + $0xb0] sm:$0xff] %v1834_v42  ;;  %v1819_v51 = vadd.f32 %v1787_v39, %v1755_v25  ;;  %v2220_v55 = vadd.f32 %v2219_v48, %v2218_v44  ;;  %v2268_v56 = vadd.f32 %v2267_v49, %v2266_v45  ;;  %v1806_v39 = vld [vmem:[#allocation6 + $0xd0] sm:$0xff]  ;;  %v1791_v49 = vld [vmem:[#allocation6 + $0x58] sm:$0xff] }
 0x4af   :  { %v1835_v53 = vadd.f32 %v1803_v40, %v1771_v43  ;;  %v1692_v57 = vmul.f32 %v2217_v46, %v3082_v29  ;;  %v1708_v58 = vmul.f32 %v2265_v47, %v3082_v29 }
 0x4b0   :  { %1851 = vst [vmem:[#allocation14 + $0x38] sm:$0xff] %v1819_v51  ;;  %v1693_v61 = vmul.f32 %v2220_v55, %v3082_v29  ;;  %v1709_v62 = vmul.f32 %v2268_v56, %v3082_v29  ;;  %v1807_v51 = vld [vmem:[#allocation6 + $0xd8] sm:$0xff] }
 0x4b1   :  { %1867 = vst [vmem:[#allocation14 + $0xb8] sm:$0xff] %v1835_v53  ;;  %v1724_v63 = vadd.f32 %v1692_v57, %v1658_v54  ;;  %v1740_v0 = vadd.f32 %v1708_v58, %v1674_v16  ;;  %v1662_v58 = vld [vmem:[#allocation3 + $0x60] sm:$0xff] }
 0x4b2   :  { %v1725_v3 = vadd.f32 %v1693_v61, %v1659_v59  ;;  %v1741_v4 = vadd.f32 %v1709_v62, %v1675_v60  ;;  %v2221_v5 = vpop.f32.mrb[20].mxu0  ;;  %v2269_v6 = vpop.f32.mrb[20].mxu1  ;;  %v1678_v59 = vld [vmem:[#allocation3 + $0xe0] sm:$0xff] }
 0x4b3   :  { %v1756_v7 = vmax.f32 %v1724_v63, 0.0  ;;  %v1772_v8 = vmax.f32 %v1740_v0, 0.0  ;;  %v2222_v11 = vpop.f32.mrb[21].mxu0  ;;  %v2270_v12 = vpop.f32.mrb[21].mxu1 }
 0x4b4   :  { %v1757_v13 = vmax.f32 %v1725_v3, 0.0  ;;  %v1773_v14 = vmax.f32 %v1741_v4, 0.0  ;;  %v2223_v15 = vadd.f32 %v2222_v11, %v2221_v5  ;;  %v2271_v17 = vadd.f32 %v2270_v12, %v2269_v6  ;;  %v2224_v18 = vpop.f32.mrb[22].mxu0  ;;  %v2272_v19 = vpop.f32.mrb[22].mxu1  ;;  %v1663_v4 = vld [vmem:[#allocation3 + $0x68] sm:$0xff]  ;;  %v1808_v11 = vld [vmem:[#allocation6 + $0xe0] sm:$0xff] }
 0x4b5   :  { %v1820_v20 = vadd.f32 %v1788_v1, %v1756_v7  ;;  %v1836_v21 = vadd.f32 %v1804_v2, %v1772_v8  ;;  %v2225_v24 = vpop.f32.mrb[23].mxu0  ;;  %v2273_v26 = vpop.f32.mrb[23].mxu1  ;;  %v1679_v5 = vld [vmem:[#allocation3 + $0xe8] sm:$0xff] }
 0x4b6   :  { %v1821_v27 = vadd.f32 %v1789_v9, %v1757_v13  ;;  %v1837_v28 = vadd.f32 %v1805_v10, %v1773_v14  ;;  %v1694_v30 = vmul.f32 %v2223_v15, %v3082_v29  ;;  %v1710_v31 = vmul.f32 %v2271_v17, %v3082_v29  ;;  %v1792_v10 = vld [vmem:[#allocation6 + $0x60] sm:$0xff] }
 0x4b7   :  { %1852 = vst [vmem:[#allocation14 + $0x40] sm:$0xff] %v1820_v20  ;;  %1868 = vst [vmem:[#allocation14 + $0xc0] sm:$0xff] %v1836_v21  ;;  %v2226_v32 = vadd.f32 %v2225_v24, %v2224_v18  ;;  %v2274_v33 = vadd.f32 %v2273_v26, %v2272_v19  ;;  %v1793_v19 = vld [vmem:[#allocation6 + $0x68] sm:$0xff] }
 0x4b8   :  { %1853 = vst [vmem:[#allocation14 + $0x48] sm:$0xff] %v1821_v27  ;;  %1869 = vst [vmem:[#allocation14 + $0xc8] sm:$0xff] %v1837_v28  ;;  %v1726_v34 = vadd.f32 %v1694_v30, %v1660_v22  ;;  %v1742_v35 = vadd.f32 %v1710_v31, %v1676_v23  ;;  %v1809_v20 = vld [vmem:[#allocation6 + $0xe8] sm:$0xff] }
 0x4b9   :  { %v1695_v40 = vmul.f32 %v2226_v32, %v3082_v29  ;;  %v1711_v50 = vmul.f32 %v2274_v33, %v3082_v29 }
 0x4ba   :  { %v1758_v52 = vmax.f32 %v1726_v34, 0.0  ;;  %v1774_v41 = vmax.f32 %v1742_v35, 0.0  ;;  %v2227_v42 = vpop.f32.mrb[24].mxu0  ;;  %v2275_v25 = vpop.f32.mrb[24].mxu1 }
 0x4bb   :  { %v1727_v43 = vadd.f32 %v1695_v40, %v1661_v36  ;;  %v1743_v44 = vadd.f32 %v1711_v50, %v1677_v37  ;;  %v2228_v45 = vpop.f32.mrb[25].mxu0  ;;  %v2276_v46 = vpop.f32.mrb[25].mxu1  ;;  %v1664_v37 = vld [vmem:[#allocation3 + $0x70] sm:$0xff] }
 0x4bc   :  { %v1822_v47 = vadd.f32 %v1790_v38, %v1758_v52  ;;  %v1838_v48 = vadd.f32 %v1806_v39, %v1774_v41  ;;  %v2229_v53 = vadd.f32 %v2228_v45, %v2227_v42  ;;  %v2277_v54 = vadd.f32 %v2276_v46, %v2275_v25  ;;  %v2230_v16 = vpop.f32.mrb[26].mxu0  ;;  %v2278_v55 = vpop.f32.mrb[26].mxu1  ;;  %v1680_v38 = vld [vmem:[#allocation3 + $0xf0] sm:$0xff]  ;;  %v1665_v41 = vld [vmem:[#allocation3 + $0x78] sm:$0xff] }
 0x4bd   :  { %v1759_v56 = vmax.f32 %v1727_v43, 0.0  ;;  %v1775_v57 = vmax.f32 %v1743_v44, 0.0  ;;  %v2231_v60 = vpop.f32.mrb[27].mxu0  ;;  %v2279_v61 = vpop.f32.mrb[27].mxu1  ;;  %v1681_v42 = vld [vmem:[#allocation3 + $0xf8] sm:$0xff]  ;;  %v1794_v46 = vld [vmem:[#allocation6 + $0x70] sm:$0xff] }
 0x4be   :  { %1854 = vst [vmem:[#allocation14 + $0x50] sm:$0xff] %v1822_v47  ;;  %1870 = vst [vmem:[#allocation14 + $0xd0] sm:$0xff] %v1838_v48  ;;  %v1696_v62 = vmul.f32 %v2229_v53, %v3082_v29  ;;  %v1712_v63 = vmul.f32 %v2277_v54, %v3082_v29  ;;  %v2232_v0 = vadd.f32 %v2231_v60, %v2230_v16  ;;  %v1810_v47 = vld [vmem:[#allocation6 + $0xf0] sm:$0xff]  ;;  %v1795_v54 = vld [vmem:[#allocation6 + $0x78] sm:$0xff] }
 0x4bf   :  { %v2280_v1 = vadd.f32 %v2279_v61, %v2278_v55  ;;  %v1823_v2 = vadd.f32 %v1791_v49, %v1759_v56  ;;  %v1839_v3 = vadd.f32 %v1807_v51, %v1775_v57  ;;  %v1811_v16 = vld [vmem:[#allocation6 + $0xf8] sm:$0xff] }
 0x4c0   :  { %v1728_v6 = vadd.f32 %v1696_v62, %v1662_v58  ;;  %v1744_v7 = vadd.f32 %v1712_v63, %v1678_v59  ;;  %v1697_v8 = vmul.f32 %v2232_v0, %v3082_v29 }
 0x4c1   :  { %v1713_v9 = vmul.f32 %v2280_v1, %v3082_v29  ;;  %1855 = vst [vmem:[#allocation14 + $0x58] sm:$0xff] %v1823_v2  ;;  %1871 = vst [vmem:[#allocation14 + $0xd8] sm:$0xff] %v1839_v3 }
 0x4c2   :  { %v1760_v12 = vmax.f32 %v1728_v6, 0.0  ;;  %v1776_v13 = vmax.f32 %v1744_v7, 0.0  ;;  %v1729_v14 = vadd.f32 %v1697_v8, %v1663_v4  ;;  %v2233_v17 = vpop.f32.mrb[28].mxu0  ;;  %v2281_v18 = vpop.f32.mrb[28].mxu1 }
 0x4c3   :  { %v1745_v15 = vadd.f32 %v1713_v9, %v1679_v5  ;;  %v2234_v21 = vpop.f32.mrb[29].mxu0  ;;  %v2282_v22 = vpop.f32.mrb[29].mxu1 }
 0x4c4   :  { %v1824_v23 = vadd.f32 %v1792_v10, %v1760_v12  ;;  %v1840_v24 = vadd.f32 %v1808_v11, %v1776_v13  ;;  %v1761_v26 = vmax.f32 %v1729_v14, 0.0  ;;  %v2236_v28 = vpop.f32.mrb[30].mxu0  ;;  %v2284_v30 = vpop.f32.mrb[30].mxu1  ;;  %v2235_v31 = vadd.f32 %v2234_v21, %v2233_v17 }
 0x4c5   :  { %v1777_v27 = vmax.f32 %v1745_v15, 0.0  ;;  %v2283_v32 = vadd.f32 %v2282_v22, %v2281_v18  ;;  %v2237_v33 = vpop.f32.mrb[31].mxu0  ;;  %v2285_v34 = vpop.f32.mrb[31].mxu1 }
 0x4c6   :  { %1856 = vst [vmem:[#allocation14 + $0x60] sm:$0xff] %v1824_v23  ;;  %1872 = vst [vmem:[#allocation14 + $0xe0] sm:$0xff] %v1840_v24  ;;  %v1825_v35 = vadd.f32 %v1793_v19, %v1761_v26  ;;  %v2238_v39 = vadd.f32 %v2237_v33, %v2236_v28  ;;  %v2286_v40 = vadd.f32 %v2285_v34, %v2284_v30 }
 0x4c7   :  { %v1841_v36 = vadd.f32 %v1809_v20, %v1777_v27  ;;  %v1698_v50 = vmul.f32 %v2235_v31, %v3082_v29  ;;  %v1714_v52 = vmul.f32 %v2283_v32, %v3082_v29 }
 0x4c8   :  { %1857 = vst [vmem:[#allocation14 + $0x68] sm:$0xff] %v1825_v35  ;;  %v1699_v25 = vmul.f32 %v2238_v39, %v3082_v29  ;;  %v1715_v43 = vmul.f32 %v2286_v40, %v3082_v29 }
 0x4c9   :  { %1873 = vst [vmem:[#allocation14 + $0xe8] sm:$0xff] %v1841_v36  ;;  %v1730_v44 = vadd.f32 %v1698_v50, %v1664_v37  ;;  %v1746_v45 = vadd.f32 %v1714_v52, %v1680_v38 }
 0x4ca   :  { %v1731_v48 = vadd.f32 %v1699_v25, %v1665_v41  ;;  %v1747_v49 = vadd.f32 %v1715_v43, %v1681_v42 }
 0x4cb   :  { %v1762_v51 = vmax.f32 %v1730_v44, 0.0  ;;  %v1778_v53 = vmax.f32 %v1746_v45, 0.0 }
 0x4cc   :  { %v1763_v55 = vmax.f32 %v1731_v48, 0.0  ;;  %v1779_v56 = vmax.f32 %v1747_v49, 0.0 }
 0x4cd   :  { %v1826_v57 = vadd.f32 %v1794_v46, %v1762_v51  ;;  %v1842_v58 = vadd.f32 %v1810_v47, %v1778_v53 }
 0x4ce   :  { %v1827_v59 = vadd.f32 %v1795_v54, %v1763_v55  ;;  %v1843_v60 = vadd.f32 %v1811_v16, %v1779_v56 }
 0x4cf   :  { %1858 = vst [vmem:[#allocation14 + $0x70] sm:$0xff] %v1826_v57  ;;  %1874 = vst [vmem:[#allocation14 + $0xf0] sm:$0xff] %v1842_v58 }
 0x4d0   :  { %1859 = vst [vmem:[#allocation14 + $0x78] sm:$0xff] %v1827_v59  ;;  %1875 = vst [vmem:[#allocation14 + $0xf8] sm:$0xff] %v1843_v60 }
 0x4d1   :  { %2764 = shalt.err (!%p2761_p12)
}
 0x4d2   :  { %s2765_s21 = scalar_lea.hbm %s3138_s7, 4096 }
 0x4d3   :  { %p2766_p13 = scmp.ne.s32.totalorder %s3138_s7, %s2765_s21  ;;  %p2769_p0 = scmp.lt.u32.totalorder %s2765_s21, %s3138_s7 }
 0x4d5   :  { %p2771_p1 = pnand %p2769_p0, %p2766_p13 }
 0x4d7   :  { %2774 = shalt.err (!%p2771_p1)
}
 0x4d8   :  { %1887 = dma.vmem_to_hbm [thread:$0]  %s1882_s18, 4096, %s3138_s7, [#allocation8], %s2796_s22, %s2796_s22, %s2797_s23  }
 0x4d9   :  { %2787 = dma.done.wait [#allocation8], 4096  }
 0x4da   :  { %2788 = vsyncadd [#allocation8], 4294963200 }
 0x4db   :  { %1891 = vsyncpa [#allocation7], 1 }
 0x4dc   :  { %1892 = vsyncpa [#allocation10], 1 }
 0x4dd   :  { %1893 = vsyncpa [#allocation13], 1 }
 0x4de   :  { %1894 = vsyncpa [#allocation8], 1 }

</bundles_post_ra>
